<compile_context>
chip_gen: v5e
topology: v5e:2x2
jax: 0.10.0
libtpu: 0.0.40
codegen_flags: <defaults>
</compile_context>

<pallas_src>
import functools

import jax
import jax.numpy as jnp
from jax.experimental import pallas as pl
from jax.experimental.pallas import tpu as pltpu


# ----------------------------- Pallas kernel ------------------------------ #
def _convmm_lrelu_kernel(w_ref, p_ref, o_ref, *, alpha):
    """out[Cout, tm] = W[Cout, K] @ P[K, tm], fused LeakyReLU(alpha) epilogue.

    Inputs are bf16 (MXU-native); accumulation + activation stay in f32.
    """
    y = jnp.dot(w_ref[...], p_ref[...], preferred_element_type=jnp.float32)
    if alpha is not None:
        y = jnp.where(y > 0, y, alpha * y)
    o_ref[...] = y.astype(o_ref.dtype)


def conv_gemm_pallas(w_flat, patches, alpha, *, mxu_dtype=jnp.bfloat16):
    """Transposed conv-GEMM: (Cout, K) x (K, M) -> (Cout, M), lane-dense in M."""
    Cout, K = w_flat.shape
    K2, M = patches.shape
    assert K == K2

    # Split M across TensorCores only when there is enough work (layer 1 only,
    # M = 3072).  Keeps per-core grid length at 1 and each block a multiple of
    # 128 lanes.  Entire per-layer working set is << 1 MiB, so no VMEM concern
    # on any generation (v5e/v6e 128 MiB, v7x 64 MiB).
    if M >= 2048 and M % 256 == 0:
        grid, tm = (2,), M // 2
    else:
        grid, tm = (1,), M

    kernel = functools.partial(_convmm_lrelu_kernel, alpha=alpha)
    return pl.pallas_call(
        kernel,
        out_shape=jax.ShapeDtypeStruct((Cout, M), jnp.float32),
        grid=grid,
        in_specs=[
            pl.BlockSpec((Cout, K), lambda i: (0, 0)),   # weights: resident
            pl.BlockSpec((K, tm), lambda i: (0, i)),     # patches: split on M
        ],
        out_specs=pl.BlockSpec((Cout, tm), lambda i: (0, i)),
        compiler_params=pltpu.CompilerParams(dimension_semantics=("parallel",)),
    )(w_flat.astype(mxu_dtype), patches.astype(mxu_dtype))


# ------------------------------- JAX glue ---------------------------------- #
def _im2col_cnhw(x, kh, kw, stride, pad):
    """x: (C, N, H, W) -> patches (C*kh*kw, N*Ho*Wo).

    K ordering is (c, i, j), matching PyTorch weight.reshape(Cout, Cin*kh*kw).
    No transposes: strided slices + stack along a new axis + reshape only.
    """
    if pad > 0:
        x = jnp.pad(x, ((0, 0), (0, 0), (pad, pad), (pad, pad)))
    C, N, H, W = x.shape
    Ho = (H - kh) // stride + 1
    Wo = (W - kw) // stride + 1
    pieces = [
        x[:, :, i:i + stride * Ho:stride, j:j + stride * Wo:stride]
        for i in range(kh) for j in range(kw)
    ]                                                # each (C, N, Ho, Wo)
    p = jnp.stack(pieces, axis=1)                    # (C, kh*kw, N, Ho, Wo)
    return p.reshape(C * kh * kw, N * Ho * Wo), Ho, Wo


def conv2d_lrelu(x_cnhw, w, stride, pad, alpha):
    """Conv2d(bias=False) + optional LeakyReLU; CNHW in, CNHW out."""
    Cout, Cin, kh, kw = w.shape
    patches, Ho, Wo = _im2col_cnhw(x_cnhw, kh, kw, stride, pad)
    w_flat = w.reshape(Cout, Cin * kh * kw)          # (Cout, K), k = (c, i, j)
    y = conv_gemm_pallas(w_flat, patches, alpha)     # (Cout, N*Ho*Wo) f32
    N = x_cnhw.shape[1]
    return y.reshape(Cout, N, Ho, Wo)


# --------------------------- Parameters / model ---------------------------- #
def init_params(key, num_img_channels, base):
    ks = jax.random.split(key, 7)
    std = 0.02
    convs = [
        std * jax.random.normal(ks[0], (base, num_img_channels, 4, 4), jnp.float32),
        std * jax.random.normal(ks[1], (base * 2, base, 4, 4), jnp.float32),
        std * jax.random.normal(ks[2], (base * 4, base * 2, 4, 4), jnp.float32),
        std * jax.random.normal(ks[3], (base * 8, base * 4, 4, 4), jnp.float32),
        std * jax.random.normal(ks[4], (1, base * 8, 4, 4), jnp.float32),
    ]
    fc_w = std * jax.random.normal(ks[5], (1, 3), jnp.float32)   # Linear(3, 1)
    fc_b = std * jax.random.normal(ks[6], (1,), jnp.float32)
    return {"convs": convs, "fc_w": fc_w, "fc_b": fc_b}


def discriminator_forward(x_nchw, params):
    # norm_layer_type == 'none' path of the PyTorch module.
    N = x_nchw.shape[0]
    h = jnp.transpose(x_nchw, (1, 0, 2, 3))          # NCHW -> CNHW, once
    # Four strided convs (k4, s2, p1) + LeakyReLU(0.2), each one Pallas call.
    for w in params["convs"][:4]:
        h = conv2d_lrelu(h, w, stride=2, pad=1, alpha=0.2)
    # Final conv (k4, s1, p0, Cout=1) + Flatten + Linear(3,1): <15 KFLOPs,
    # done in plain jnp to avoid two extra kernel launches.
    w5 = params["convs"][4]
    patches, Ho, Wo = _im2col_cnhw(h, 4, 4, 1, 0)    # (1024, N*3*1)
    y = jnp.dot(w5.reshape(1, -1), patches)          # (1, N*3*1)
    flat = y.reshape(N, Ho * Wo)                     # == PyTorch Flatten of (N,1,3,1)
    out = flat @ params["fc_w"].T + params["fc_b"]   # (N, 1)
    return out
    # TODO(synk): spectral/layer/instance norm_layer_type variants not implemented.


# ---------------------------------- main ----------------------------------- #
if __name__ == "__main__":
    key = jax.random.PRNGKey(0)
    k_x, k_p = jax.random.split(key)

    num_img_channels = 3
    base_num_out_channels = 8
    batch = 2
    # The module's Linear(1*3*1, 1) implies 96x64 input images.
    x = jax.random.normal(k_x, (batch, num_img_channels, 96, 64), jnp.float32)
    params = init_params(k_p, num_img_channels, base_num_out_channels)

    fwd = jax.jit(discriminator_forward)
    out = jax.block_until_ready(fwd(x, params))
    assert out.shape == (batch, 1), out.shape
    print("KERNEL_OK")
</pallas_src>

<mosaic_0001>
module attributes {stable_mosaic.version = 11 : i64} {
  func.func @_convmm_lrelu_kernel(%arg0: i32, %arg1: memref<8x48xbf16, #tpu.memory_space<vmem>>, %arg2: memref<48x1536xbf16, #tpu.memory_space<vmem>>, %arg3: memref<8x1536xf32, #tpu.memory_space<vmem>>) attributes {dimension_semantics = [#tpu.dimension_semantics<parallel>], iteration_bounds = array<i64: 2>, scalar_prefetch = 0 : i64, scratch_operands = 0 : i64, tpu.core_type = #tpu.core_type<tc>, window_params = [{pipeline_mode = #tpu.pipeline_mode<synchronous>, transform_indices = @transform_0, window_bounds = array<i64: 8, 48>}, {transform_indices = @transform_1, window_bounds = array<i64: 48, 1536>}, {transform_indices = @transform_2, window_bounds = array<i64: 8, 1536>}]} {
    %c0 = arith.constant 0 : index
    %c0_0 = arith.constant 0 : index
    %0 = vector.load %arg1[%c0, %c0_0] : memref<8x48xbf16, #tpu.memory_space<vmem>>, vector<8x48xbf16>
    %c0_1 = arith.constant 0 : index
    %c0_2 = arith.constant 0 : index
    %1 = vector.load %arg2[%c0_1, %c0_2] : memref<48x1536xbf16, #tpu.memory_space<vmem>>, vector<48x1536xbf16>
    %cst = arith.constant dense<0.000000e+00> : vector<8x1536xf32>
    %2 = tpu.matmul %0, %1, %cst {dimension_numbers = #tpu.dot_dimension_numbers<[1], [0], [0], [1], [0, 0, 1, 1], [], []>} : vector<8x48xbf16>, vector<48x1536xbf16>, vector<8x1536xf32> -> vector<8x1536xf32>
    %cst_3 = arith.constant 0.000000e+00 : f32
    %3 = vector.broadcast %cst_3 : f32 to vector<8x1536xf32>
    %4 = arith.cmpf ogt, %2, %3 : vector<8x1536xf32>
    %cst_4 = arith.constant 2.000000e-01 : f32
    %5 = vector.broadcast %cst_4 : f32 to vector<8x1536xf32>
    %6 = arith.mulf %5, %2 : vector<8x1536xf32>
    %7 = arith.select %4, %2, %6 : vector<8x1536xi1>, vector<8x1536xf32>
    %c0_5 = arith.constant 0 : index
    %c0_6 = arith.constant 0 : index
    %8 = vector.load %arg3[%c0_5, %c0_6] : memref<8x1536xf32, #tpu.memory_space<vmem>>, vector<8x1536xf32>
    tpu.vector_store %arg3[%c0_5, %c0_6], %7 {strides = array<i32>} : memref<8x1536xf32, #tpu.memory_space<vmem>>, vector<8x1536xf32>,
    return
  }
  func.func @transform_0(%arg0: i32) -> (i32, i32) {
    %c0_i32 = arith.constant 0 : i32
    %c0_i32_0 = arith.constant 0 : i32
    %c0_i32_1 = arith.constant 0 : i32
    return %c0_i32, %c0_i32_0 : i32, i32
  }
  func.func @transform_1(%arg0: i32) -> (i32, i32) {
    %c0_i32 = arith.constant 0 : i32
    %c0_i32_0 = arith.constant 0 : i32
    return %c0_i32, %arg0 : i32, i32
  }
  func.func @transform_2(%arg0: i32) -> (i32, i32) {
    %c0_i32 = arith.constant 0 : i32
    %c0_i32_0 = arith.constant 0 : i32
    return %c0_i32, %arg0 : i32, i32
  }
}

module attributes {stable_mosaic.version = 11 : i64} {
  func.func @_convmm_lrelu_kernel(%arg0: i32, %arg1: memref<16x128xbf16, #tpu.memory_space<vmem>>, %arg2: memref<128x768xbf16, #tpu.memory_space<vmem>>, %arg3: memref<16x768xf32, #tpu.memory_space<vmem>>) attributes {dimension_semantics = [#tpu.dimension_semantics<parallel>], iteration_bounds = array<i64: 1>, scalar_prefetch = 0 : i64, scratch_operands = 0 : i64, tpu.core_type = #tpu.core_type<tc>, window_params = [{pipeline_mode = #tpu.pipeline_mode<synchronous>, transform_indices = @transform_0, window_bounds = array<i64: 16, 128>}, {transform_indices = @transform_1, window_bounds = array<i64: 128, 768>}, {transform_indices = @transform_2, window_bounds = array<i64: 16, 768>}]} {
    %c0 = arith.constant 0 : index
    %c0_0 = arith.constant 0 : index
    %0 = vector.load %arg1[%c0, %c0_0] : memref<16x128xbf16, #tpu.memory_space<vmem>>, vector<16x128xbf16>
    %c0_1 = arith.constant 0 : index
    %c0_2 = arith.constant 0 : index
    %1 = vector.load %arg2[%c0_1, %c0_2] : memref<128x768xbf16, #tpu.memory_space<vmem>>, vector<128x768xbf16>
    %cst = arith.constant dense<0.000000e+00> : vector<16x768xf32>
    %2 = tpu.matmul %0, %1, %cst {dimension_numbers = #tpu.dot_dimension_numbers<[1], [0], [0], [1], [0, 0, 1, 1], [], []>} : vector<16x128xbf16>, vector<128x768xbf16>, vector<16x768xf32> -> vector<16x768xf32>
    %cst_3 = arith.constant 0.000000e+00 : f32
    %3 = vector.broadcast %cst_3 : f32 to vector<16x768xf32>
    %4 = arith.cmpf ogt, %2, %3 : vector<16x768xf32>
    %cst_4 = arith.constant 2.000000e-01 : f32
    %5 = vector.broadcast %cst_4 : f32 to vector<16x768xf32>
    %6 = arith.mulf %5, %2 : vector<16x768xf32>
    %7 = arith.select %4, %2, %6 : vector<16x768xi1>, vector<16x768xf32>
    %c0_5 = arith.constant 0 : index
    %c0_6 = arith.constant 0 : index
    %8 = vector.load %arg3[%c0_5, %c0_6] : memref<16x768xf32, #tpu.memory_space<vmem>>, vector<16x768xf32>
    tpu.vector_store %arg3[%c0_5, %c0_6], %7 {strides = array<i32>} : memref<16x768xf32, #tpu.memory_space<vmem>>, vector<16x768xf32>,
    return
  }
  func.func @transform_0(%arg0: i32) -> (i32, i32) {
    %c0_i32 = arith.constant 0 : i32
    %c0_i32_0 = arith.constant 0 : i32
    %c0_i32_1 = arith.constant 0 : i32
    return %c0_i32, %c0_i32_0 : i32, i32
  }
  func.func @transform_1(%arg0: i32) -> (i32, i32) {
    %c0_i32 = arith.constant 0 : i32
    %c0_i32_0 = arith.constant 0 : i32
    return %c0_i32, %arg0 : i32, i32
  }
  func.func @transform_2(%arg0: i32) -> (i32, i32) {
    %c0_i32 = arith.constant 0 : i32
    %c0_i32_0 = arith.constant 0 : i32
    return %c0_i32, %arg0 : i32, i32
  }
}

module attributes {stable_mosaic.version = 11 : i64} {
  func.func @_convmm_lrelu_kernel(%arg0: i32, %arg1: memref<32x256xbf16, #tpu.memory_space<vmem>>, %arg2: memref<256x192xbf16, #tpu.memory_space<vmem>>, %arg3: memref<32x192xf32, #tpu.memory_space<vmem>>) attributes {dimension_semantics = [#tpu.dimension_semantics<parallel>], iteration_bounds = array<i64: 1>, scalar_prefetch = 0 : i64, scratch_operands = 0 : i64, tpu.core_type = #tpu.core_type<tc>, window_params = [{pipeline_mode = #tpu.pipeline_mode<synchronous>, transform_indices = @transform_0, window_bounds = array<i64: 32, 256>}, {transform_indices = @transform_1, window_bounds = array<i64: 256, 192>}, {transform_indices = @transform_2, window_bounds = array<i64: 32, 192>}]} {
    %c0 = arith.constant 0 : index
    %c0_0 = arith.constant 0 : index
    %0 = vector.load %arg1[%c0, %c0_0] : memref<32x256xbf16, #tpu.memory_space<vmem>>, vector<32x256xbf16>
    %c0_1 = arith.constant 0 : index
    %c0_2 = arith.constant 0 : index
    %1 = vector.load %arg2[%c0_1, %c0_2] : memref<256x192xbf16, #tpu.memory_space<vmem>>, vector<256x192xbf16>
    %cst = arith.constant dense<0.000000e+00> : vector<32x192xf32>
    %2 = tpu.matmul %0, %1, %cst {dimension_numbers = #tpu.dot_dimension_numbers<[1], [0], [0], [1], [0, 0, 1, 1], [], []>} : vector<32x256xbf16>, vector<256x192xbf16>, vector<32x192xf32> -> vector<32x192xf32>
    %cst_3 = arith.constant 0.000000e+00 : f32
    %3 = vector.broadcast %cst_3 : f32 to vector<32x192xf32>
    %4 = arith.cmpf ogt, %2, %3 : vector<32x192xf32>
    %cst_4 = arith.constant 2.000000e-01 : f32
    %5 = vector.broadcast %cst_4 : f32 to vector<32x192xf32>
    %6 = arith.mulf %5, %2 : vector<32x192xf32>
    %7 = arith.select %4, %2, %6 : vector<32x192xi1>, vector<32x192xf32>
    %c0_5 = arith.constant 0 : index
    %c0_6 = arith.constant 0 : index
    %8 = vector.load %arg3[%c0_5, %c0_6] : memref<32x192xf32, #tpu.memory_space<vmem>>, vector<32x192xf32>
    tpu.vector_store %arg3[%c0_5, %c0_6], %7 {strides = array<i32>} : memref<32x192xf32, #tpu.memory_space<vmem>>, vector<32x192xf32>,
    return
  }
  func.func @transform_0(%arg0: i32) -> (i32, i32) {
    %c0_i32 = arith.constant 0 : i32
    %c0_i32_0 = arith.constant 0 : i32
    %c0_i32_1 = arith.constant 0 : i32
    return %c0_i32, %c0_i32_0 : i32, i32
  }
  func.func @transform_1(%arg0: i32) -> (i32, i32) {
    %c0_i32 = arith.constant 0 : i32
    %c0_i32_0 = arith.constant 0 : i32
    return %c0_i32, %arg0 : i32, i32
  }
  func.func @transform_2(%arg0: i32) -> (i32, i32) {
    %c0_i32 = arith.constant 0 : i32
    %c0_i32_0 = arith.constant 0 : i32
    return %c0_i32, %arg0 : i32, i32
  }
}

module attributes {stable_mosaic.version = 11 : i64} {
  func.func @_convmm_lrelu_kernel(%arg0: i32, %arg1: memref<64x512xbf16, #tpu.memory_space<vmem>>, %arg2: memref<512x48xbf16, #tpu.memory_space<vmem>>, %arg3: memref<64x48xf32, #tpu.memory_space<vmem>>) attributes {dimension_semantics = [#tpu.dimension_semantics<parallel>], iteration_bounds = array<i64: 1>, scalar_prefetch = 0 : i64, scratch_operands = 0 : i64, tpu.core_type = #tpu.core_type<tc>, window_params = [{pipeline_mode = #tpu.pipeline_mode<synchronous>, transform_indices = @transform_0, window_bounds = array<i64: 64, 512>}, {transform_indices = @transform_1, window_bounds = array<i64: 512, 48>}, {transform_indices = @transform_2, window_bounds = array<i64: 64, 48>}]} {
    %c0 = arith.constant 0 : index
    %c0_0 = arith.constant 0 : index
    %0 = vector.load %arg1[%c0, %c0_0] : memref<64x512xbf16, #tpu.memory_space<vmem>>, vector<64x512xbf16>
    %c0_1 = arith.constant 0 : index
    %c0_2 = arith.constant 0 : index
    %1 = vector.load %arg2[%c0_1, %c0_2] : memref<512x48xbf16, #tpu.memory_space<vmem>>, vector<512x48xbf16>
    %cst = arith.constant dense<0.000000e+00> : vector<64x48xf32>
    %2 = tpu.matmul %0, %1, %cst {dimension_numbers = #tpu.dot_dimension_numbers<[1], [0], [0], [1], [0, 0, 1, 1], [], []>} : vector<64x512xbf16>, vector<512x48xbf16>, vector<64x48xf32> -> vector<64x48xf32>
    %cst_3 = arith.constant 0.000000e+00 : f32
    %3 = vector.broadcast %cst_3 : f32 to vector<64x48xf32>
    %4 = arith.cmpf ogt, %2, %3 : vector<64x48xf32>
    %cst_4 = arith.constant 2.000000e-01 : f32
    %5 = vector.broadcast %cst_4 : f32 to vector<64x48xf32>
    %6 = arith.mulf %5, %2 : vector<64x48xf32>
    %7 = arith.select %4, %2, %6 : vector<64x48xi1>, vector<64x48xf32>
    %c0_5 = arith.constant 0 : index
    %c0_6 = arith.constant 0 : index
    %8 = vector.load %arg3[%c0_5, %c0_6] : memref<64x48xf32, #tpu.memory_space<vmem>>, vector<64x48xf32>
    tpu.vector_store %arg3[%c0_5, %c0_6], %7 {strides = array<i32>} : memref<64x48xf32, #tpu.memory_space<vmem>>, vector<64x48xf32>,
    return
  }
  func.func @transform_0(%arg0: i32) -> (i32, i32) {
    %c0_i32 = arith.constant 0 : i32
    %c0_i32_0 = arith.constant 0 : i32
    %c0_i32_1 = arith.constant 0 : i32
    return %c0_i32, %c0_i32_0 : i32, i32
  }
  func.func @transform_1(%arg0: i32) -> (i32, i32) {
    %c0_i32 = arith.constant 0 : i32
    %c0_i32_0 = arith.constant 0 : i32
    return %c0_i32, %arg0 : i32, i32
  }
  func.func @transform_2(%arg0: i32) -> (i32, i32) {
    %c0_i32 = arith.constant 0 : i32
    %c0_i32_0 = arith.constant 0 : i32
    return %c0_i32, %arg0 : i32, i32
  }
}

</mosaic_0001>

<bundles_post_ra>
// kernel: discriminator_forward.4
= control target key start
LH: loop header
LB: loop body
LE: loop exit
PB: predicated region body
PF: predicated region fallthrough
CT: control target
= control target key end

     0   :  { %s991_s9 = smov 0   ;;  %s993_s10 = smov 0   ;;  %s1236_s0 = inlined_call_operand.vmem [shape: bf16[8,48], index: 0, kind: input, shape index: {}]   ;;  %s1237_s1 = inlined_call_operand.vmem [shape: bf16[48,3072], index: 1, kind: input, shape index: {}]   ;;  %s1238_s2 = inlined_call_operand.vmem [shape: f32[8,3072], index: 2, kind: output, shape index: {}]  }
   0x1   :  { %s995_s11 = smov 0  }
   0x2 LB: > { %s724_s12 = sadd.s32 4294967295, %s974_s11   ;;  %s1008_s13 = sadd.s32 1, %s974_s11   ;;  %s974_s11 = sphi %s995_s11, %s1241_s11   ;;  %s970_s10 = sphi %s993_s10, %s1240_s10   ;;  %s966_s9 = sphi %s991_s9, %s1239_s9  }
   0x3   : > { %s37_s14 = ssub.s32 %s974_s11, %s1008_s13  ;;  %s40_s15 = sadd.s32 1, %s970_s10 }
   0x4   : > { %p38_p0 = scmp.eq.s32.totalorder %s37_s14, 0  ;;  %p47_p1 = scmp.ne.s32.totalorder %s970_s10, %s966_s9 }
   0x5   : > { %p48_p2 = scmp.eq.s32.totalorder %s974_s11, 0  ;;  %p727_p4 = scmp.ge.s32.totalorder %s974_s11, 2 }
   0x6   : > { %s1017_s16 = scalar_select %p38_p0, %s970_s10, %s40_s15  }
   0x7   : > { %p49_p3 = por %p48_p2, %p47_p1  ;;  %102 = sbr.rel (%p727_p4) target bundleno = 53 (0x35), region = 20 }
   0xc   : > { %105 = sbr.rel (!%p49_p3) target bundleno = 53 (0x35), region = 24  ;;  %s107_s17 = sand.u32 (%p49_p3), 1, %s970_s10  }
   0xd   : > { %s889_s18 = smul.u32 (%p49_p3), 48, %s974_s11 }
   0xe   : > { %s926_s19 = smul.u32 (%p49_p3), 288, %s107_s17 }
   0xf   : > { %s1025_s22 = scalar_lea.vmem (%p49_p3), %s1237_s1, %s889_s18 }
  0x10   : > { %v125_v0 = vld [vmem:[%s1025_s22] sm:$0xff] (%p49_p3)  ;;  %v127_v1 = vld [vmem:[%s1025_s22 + $0x8] sm:$0xff] (%p49_p3)  ;;  %v129_v2 = vld [vmem:[%s1025_s22 + $0x10] sm:$0xff] (%p49_p3)  ;;  %s1030_s23 = scalar_lea.vmem (%p49_p3), [#allocation2], %s926_s19 }
  0x11   : > { %126 = vst [vmem:[%s1030_s23] sm:$0xff] %v125_v0  ;;  %v131_v3 = vld [vmem:[%s1025_s22 + $0x18] sm:$0xff]  ;;  %v133_v4 = vld [vmem:[%s1025_s22 + $0x20] sm:$0xff]  ;;  %v135_v5 = vld [vmem:[%s1025_s22 + $0x28] sm:$0xff] }
  0x12   : > { %128 = vst [vmem:[%s1030_s23 + $0x8] sm:$0xff] %v127_v1  ;;  %v137_v6 = vld [vmem:[%s1025_s22 + $0x60] sm:$0xff]  ;;  %v139_v7 = vld [vmem:[%s1025_s22 + $0x68] sm:$0xff]  ;;  %v141_v8 = vld [vmem:[%s1025_s22 + $0x70] sm:$0xff] }
  0x13   : > { %130 = vst [vmem:[%s1030_s23 + $0x10] sm:$0xff] %v129_v2  ;;  %v143_v9 = vld [vmem:[%s1025_s22 + $0x78] sm:$0xff]  ;;  %v145_v10 = vld [vmem:[%s1025_s22 + $0x80] sm:$0xff]  ;;  %v147_v11 = vld [vmem:[%s1025_s22 + $0x88] sm:$0xff] }
  0x14   : > { %132 = vst [vmem:[%s1030_s23 + $0x18] sm:$0xff] %v131_v3  ;;  %v149_v12 = vld [vmem:[%s1025_s22 + $0xc0] sm:$0xff]  ;;  %v151_v13 = vld [vmem:[%s1025_s22 + $0xc8] sm:$0xff]  ;;  %v153_v14 = vld [vmem:[%s1025_s22 + $0xd0] sm:$0xff] }
  0x15   : > { %134 = vst [vmem:[%s1030_s23 + $0x20] sm:$0xff] %v133_v4  ;;  %v155_v15 = vld [vmem:[%s1025_s22 + $0xd8] sm:$0xff]  ;;  %v157_v16 = vld [vmem:[%s1025_s22 + $0xe0] sm:$0xff]  ;;  %v159_v17 = vld [vmem:[%s1025_s22 + $0xe8] sm:$0xff] }
  0x16   : > { %136 = vst [vmem:[%s1030_s23 + $0x28] sm:$0xff] %v135_v5  ;;  %v161_v18 = vld [vmem:[%s1025_s22 + $0x120] sm:$0xff]  ;;  %v163_v19 = vld [vmem:[%s1025_s22 + $0x128] sm:$0xff]  ;;  %v165_v20 = vld [vmem:[%s1025_s22 + $0x130] sm:$0xff] }
  0x17   : > { %138 = vst [vmem:[%s1030_s23 + $0x30] sm:$0xff] %v137_v6  ;;  %v167_v21 = vld [vmem:[%s1025_s22 + $0x138] sm:$0xff]  ;;  %v169_v22 = vld [vmem:[%s1025_s22 + $0x140] sm:$0xff]  ;;  %v171_v23 = vld [vmem:[%s1025_s22 + $0x148] sm:$0xff] }
  0x18   : > { %140 = vst [vmem:[%s1030_s23 + $0x38] sm:$0xff] %v139_v7  ;;  %v173_v24 = vld [vmem:[%s1025_s22 + $0x180] sm:$0xff]  ;;  %v175_v25 = vld [vmem:[%s1025_s22 + $0x188] sm:$0xff]  ;;  %v177_v26 = vld [vmem:[%s1025_s22 + $0x190] sm:$0xff] }
  0x19   : > { %142 = vst [vmem:[%s1030_s23 + $0x40] sm:$0xff] %v141_v8  ;;  %v179_v27 = vld [vmem:[%s1025_s22 + $0x198] sm:$0xff]  ;;  %v181_v28 = vld [vmem:[%s1025_s22 + $0x1a0] sm:$0xff]  ;;  %v183_v29 = vld [vmem:[%s1025_s22 + $0x1a8] sm:$0xff] }
  0x1a   : > { %144 = vst [vmem:[%s1030_s23 + $0x48] sm:$0xff] %v143_v9  ;;  %v185_v30 = vld [vmem:[%s1025_s22 + $0x1e0] sm:$0xff]  ;;  %v187_v31 = vld [vmem:[%s1025_s22 + $0x1e8] sm:$0xff]  ;;  %v189_v32 = vld [vmem:[%s1025_s22 + $0x1f0] sm:$0xff] }
  0x1b   : > { %146 = vst [vmem:[%s1030_s23 + $0x50] sm:$0xff] %v145_v10  ;;  %v191_v33 = vld [vmem:[%s1025_s22 + $0x1f8] sm:$0xff]  ;;  %v193_v34 = vld [vmem:[%s1025_s22 + $0x200] sm:$0xff]  ;;  %v195_v35 = vld [vmem:[%s1025_s22 + $0x208] sm:$0xff] }
  0x1c   : > { %148 = vst [vmem:[%s1030_s23 + $0x58] sm:$0xff] %v147_v11 }
  0x1d   : > { %150 = vst [vmem:[%s1030_s23 + $0x60] sm:$0xff] %v149_v12 }
  0x1e   : > { %152 = vst [vmem:[%s1030_s23 + $0x68] sm:$0xff] %v151_v13 }
  0x1f   : > { %154 = vst [vmem:[%s1030_s23 + $0x70] sm:$0xff] %v153_v14 }
  0x20   : > { %156 = vst [vmem:[%s1030_s23 + $0x78] sm:$0xff] %v155_v15 }
  0x21   : > { %158 = vst [vmem:[%s1030_s23 + $0x80] sm:$0xff] %v157_v16 }
  0x22   : > { %160 = vst [vmem:[%s1030_s23 + $0x88] sm:$0xff] %v159_v17 }
  0x23   : > { %162 = vst [vmem:[%s1030_s23 + $0x90] sm:$0xff] %v161_v18 }
  0x24   : > { %164 = vst [vmem:[%s1030_s23 + $0x98] sm:$0xff] %v163_v19 }
  0x25   : > { %166 = vst [vmem:[%s1030_s23 + $0xa0] sm:$0xff] %v165_v20 }
  0x26   : > { %168 = vst [vmem:[%s1030_s23 + $0xa8] sm:$0xff] %v167_v21 }
  0x27   : > { %170 = vst [vmem:[%s1030_s23 + $0xb0] sm:$0xff] %v169_v22 }
  0x28   : > { %172 = vst [vmem:[%s1030_s23 + $0xb8] sm:$0xff] %v171_v23 }
  0x29   : > { %174 = vst [vmem:[%s1030_s23 + $0xc0] sm:$0xff] %v173_v24 }
  0x2a   : > { %176 = vst [vmem:[%s1030_s23 + $0xc8] sm:$0xff] %v175_v25 }
  0x2b   : > { %178 = vst [vmem:[%s1030_s23 + $0xd0] sm:$0xff] %v177_v26 }
  0x2c   : > { %180 = vst [vmem:[%s1030_s23 + $0xd8] sm:$0xff] %v179_v27 }
  0x2d   : > { %182 = vst [vmem:[%s1030_s23 + $0xe0] sm:$0xff] %v181_v28 }
  0x2e   : > { %184 = vst [vmem:[%s1030_s23 + $0xe8] sm:$0xff] %v183_v29 }
  0x2f   : > { %186 = vst [vmem:[%s1030_s23 + $0xf0] sm:$0xff] %v185_v30 }
  0x30   : > { %188 = vst [vmem:[%s1030_s23 + $0xf8] sm:$0xff] %v187_v31 }
  0x31   : > { %190 = vst [vmem:[%s1030_s23 + $0x100] sm:$0xff] %v189_v32 }
  0x32   : > { %192 = vst [vmem:[%s1030_s23 + $0x108] sm:$0xff] %v191_v33 }
  0x33   : > { %194 = vst [vmem:[%s1030_s23 + $0x110] sm:$0xff] %v193_v34 }
  0x34   : > { %196 = vst [vmem:[%s1030_s23 + $0x118] sm:$0xff] %v195_v35 }
  0x35 PF: > { %p729_p5 = scmp.ge.s32.totalorder %s974_s11, 1  ;;  %p201_p6 = scmp.lt.s32.totalorder %s974_s11, 3 }
  0x37   : > { %p202_p7 = pnand %p729_p5, %p201_p6 }
  0x38   : > { %s208_s24 = sand.u32 (!%p202_p7), 1, %s966_s9   ;;  %s230_s29 = smul.u32 (!%p202_p7), 12, %s724_s12 }
  0x39   : > { %205 = sbr.rel (%p202_p7) target bundleno = 250 (0xfa), region = 47 }
  0x3a   : > { %s927_s25 = smul.u32 (!%p202_p7), 288, %s208_s24  ;;  %p231_p8 = scmp.lt.s32.totalorder (!%p202_p7), %s230_s29, 23 }
  0x3c   : > { %s1104_s26 = scalar_lea.vmem (!%p202_p7), [#allocation2], %s927_s25 }
  0x3e   : > { %v829_v36 = vld [vmem:[%s1104_s26 + $0xc0] sm:$0xf]  ;;  %v920_v37 = vld [vmem:[%s1104_s26 + $0xec] sm:$0xf0]  ;;  %v914_v38 = vld [vmem:[%s1104_s26 + $0xc4] sm:$0xf] }
  0x3f   : > { %v830_v39 = vor.u32 %v920_v37, %v829_v36  ;;  %v831_v40 = vld [vmem:[%s1104_s26 + $0xf0] sm:$0xf0]  ;;  %v837_v41 = vld [vmem:[%s1104_s26 + $0xc8] sm:$0xf]  ;;  %v921_v42 = vld [vmem:[%s1104_s26 + $0xf4] sm:$0xf0] }
  0x40   : > { %v834_v43 = vor.u32 %v914_v38, %v831_v40  ;;  %v838_v44 = vor.u32 %v921_v42, %v837_v41  ;;  %v915_v45 = vld [vmem:[%s1104_s26 + $0xcc] sm:$0xf]  ;;  %v839_v46 = vld [vmem:[%s1104_s26 + $0xf8] sm:$0xf0]  ;;  %v781_v47 = vld [vmem:[%s1104_s26 + $0x60] sm:$0xf] }
  0x41   : > { %463 = vmatpush.bf16.msra.mxu0 %v830_v39  ;;  %v842_v48 = vor.u32 %v915_v45, %v839_v46  ;;  %v908_v49 = vld [vmem:[%s1104_s26 + $0x8c] sm:$0xf0]  ;;  %v902_v50 = vld [vmem:[%s1104_s26 + $0x64] sm:$0xf]  ;;  %v783_v51 = vld [vmem:[%s1104_s26 + $0x90] sm:$0xf0] }
  0x42   : > { %vm454_vm0 = vcmask 392192   ;;  %476 = vmatpush.bf16.msra.mxu1 %v834_v43  ;;  %489 = vmatpush.bf16.msra.mxu2 %v838_v44  ;;  %v782_v52 = vor.u32 %v908_v49, %v781_v47  ;;  %v786_v53 = vor.u32 %v902_v50, %v783_v51  ;;  %v789_v54 = vld [vmem:[%s1104_s26 + $0x68] sm:$0xf]  ;;  %v909_v55 = vld [vmem:[%s1104_s26 + $0x94] sm:$0xf0]  ;;  %s1243_s29 = smov (!%p231_p8, %s230_s29), 23 }
  0x43   : > { %v903_v56 = vld [vmem:[%s1104_s26 + $0x6c] sm:$0xf]  ;;  %502 = vmatpush.bf16.msra.mxu3 %v842_v48  ;;  %v790_v57 = vor.u32 %v909_v55, %v789_v54  ;;  %v791_v58 = vld [vmem:[%s1104_s26 + $0x98] sm:$0xf0]  ;;  %v733_v59 = vld [vmem:[%s1104_s26] sm:$0xf] }
  0x44   : > { %v896_v60 = vld [vmem:[%s1104_s26 + $0x2c] sm:$0xf0]  ;;  %v794_v61 = vor.u32 %v903_v56, %v791_v58  ;;  %v890_v62 = vld [vmem:[%s1104_s26 + $0x4] sm:$0xf]  ;;  %v735_v63 = vld [vmem:[%s1104_s26 + $0x30] sm:$0xf0] }
  0x45   : > { %v741_v0 = vld [vmem:[%s1104_s26 + $0x8] sm:$0xf]  ;;  %464 = vmatpush.bf16.msra.mxu0 %v782_v52  ;;  %v734_v1 = vor.u32 %v896_v60, %v733_v59  ;;  %v897_v2 = vld [vmem:[%s1104_s26 + $0x34] sm:$0xf0]  ;;  %v891_v3 = vld [vmem:[%s1104_s26 + $0xc] sm:$0xf]  ;;  %v738_v5 = vor.u32 %v890_v62, %v735_v63 }
  0x46   : > { %v743_v4 = vld [vmem:[%s1104_s26 + $0x38] sm:$0xf0]  ;;  %477 = vmatpush.bf16.msra.mxu1 %v786_v53  ;;  %490 = vmatpush.bf16.msra.mxu2 %v790_v57  ;;  %v742_v6 = vor.u32 %v897_v2, %v741_v0  ;;  %v853_v7 = vld [vmem:[%s1104_s26 + $0xd8] sm:$0xf]  ;;  %v923_v8 = vld [vmem:[%s1104_s26 + $0x104] sm:$0xf0] }
  0x47   : > { %v917_v9 = vld [vmem:[%s1104_s26 + $0xdc] sm:$0xf]  ;;  %503 = vmatpush.bf16.msra.mxu3 %v794_v61  ;;  %v746_v10 = vor.u32 %v891_v3, %v743_v4  ;;  %v1136_v11 = vld [vmem:[%s1236_s0] sm:$0xf]  ;;  %v854_v12 = vor.u32 %v923_v8, %v853_v7  ;;  %v855_v13 = vld [vmem:[%s1104_s26 + $0x108] sm:$0xf0] }
  0x48   : > { %v845_v14 = vld [vmem:[%s1104_s26 + $0xd0] sm:$0xf]  ;;  %v922_v15 = vld [vmem:[%s1104_s26 + $0xfc] sm:$0xf0]  ;;  %v858_v16 = vor.u32 %v917_v9, %v855_v13  ;;  %v916_v17 = vld [vmem:[%s1104_s26 + $0xd4] sm:$0xf] }
  0x49   : > { %v847_v18 = vld [vmem:[%s1104_s26 + $0x100] sm:$0xf0]  ;;  %v805_v19 = vld [vmem:[%s1104_s26 + $0x78] sm:$0xf]  ;;  %465 = vmatpush.bf16.msra.mxu0 %v734_v1  ;;  %v911_v20 = vld [vmem:[%s1104_s26 + $0xa4] sm:$0xf0]  ;;  %v846_v23 = vor.u32 %v922_v15, %v845_v14 }
  0x4a   : > { %v905_v21 = vld [vmem:[%s1104_s26 + $0x7c] sm:$0xf]  ;;  %v807_v22 = vld [vmem:[%s1104_s26 + $0xa8] sm:$0xf0]  ;;  %478 = vmatpush.bf16.msra.mxu1 %v738_v5  ;;  %491 = vmatpush.bf16.msra.mxu2 %v742_v6  ;;  %v797_v24 = vld [vmem:[%s1104_s26 + $0x70] sm:$0xf]  ;;  %v850_v25 = vor.u32 %v916_v17, %v847_v18  ;;  %v806_v26 = vor.u32 %v911_v20, %v805_v19 }
  0x4b   : > { %504 = vmatpush.bf16.msra.mxu3 %v746_v10  ;;  %v910_v27 = vld [vmem:[%s1104_s26 + $0x9c] sm:$0xf0]  ;;  %v904_v28 = vld [vmem:[%s1104_s26 + $0x74] sm:$0xf]  ;;  %v799_v29 = vld [vmem:[%s1104_s26 + $0xa0] sm:$0xf0]  ;;  %v810_v30 = vor.u32 %v905_v21, %v807_v22 }
  0x4c   : > { %875 = vmatmul.msk.bf16.vlgmr.msra.gmra.mxu0 %vm454_vm0, %v1136_v11  ;;  %v757_v31 = vld [vmem:[%s1104_s26 + $0x18] sm:$0xf]  ;;  %v899_v32 = vld [vmem:[%s1104_s26 + $0x44] sm:$0xf0]  ;;  %v893_v33 = vld [vmem:[%s1104_s26 + $0x1c] sm:$0xf]  ;;  %v798_v37 = vor.u32 %v910_v27, %v797_v24  ;;  %v802_v41 = vor.u32 %v904_v28, %v799_v29 }
  0x4d   : > { %876 = vmatmul.msk.bf16.vlgmr.msra.gmra.mxu1 %vm454_vm0, %v1136_v11  ;;  %877 = vmatmul.msk.bf16.vlgmr.msra.gmra.mxu2 %vm454_vm0, %v1136_v11  ;;  %v759_v34 = vld [vmem:[%s1104_s26 + $0x48] sm:$0xf0]  ;;  %v749_v35 = vld [vmem:[%s1104_s26 + $0x10] sm:$0xf]  ;;  %v898_v36 = vld [vmem:[%s1104_s26 + $0x3c] sm:$0xf0]  ;;  %v758_v42 = vor.u32 %v899_v32, %v757_v31 }
  0x4e   : > { %541 = vmatpush.bf16.msrb.mxu2 %v854_v12  ;;  %878 = vmatmul.msk.bf16.vlgmr.msra.gmra.mxu3 %vm454_vm0, %v1136_v11  ;;  %v869_v38 = vld [vmem:[%s1104_s26 + $0xe8] sm:$0xf]  ;;  %v925_v39 = vld [vmem:[%s1104_s26 + $0x114] sm:$0xf0]  ;;  %v919_v40 = vld [vmem:[%s1104_s26 + $0xec] sm:$0xf]  ;;  %v762_v46 = vor.u32 %v893_v33, %v759_v34  ;;  %v750_v55 = vor.u32 %v898_v36, %v749_v35 }
  0x4f   : > { %554 = vmatpush.bf16.msrb.mxu3 %v858_v16  ;;  %515 = vmatpush.bf16.msrb.mxu0 %v846_v23  ;;  %v892_v43 = vld [vmem:[%s1104_s26 + $0x14] sm:$0xf]  ;;  %v751_v44 = vld [vmem:[%s1104_s26 + $0x40] sm:$0xf0]  ;;  %v871_v45 = vld [vmem:[%s1104_s26 + $0x118] sm:$0xf0]  ;;  %v870_v47 = vor.u32 %v925_v39, %v869_v38 }
  0x50   : > { %528 = vmatpush.bf16.msrb.mxu1 %v850_v25  ;;  %v861_v48 = vld [vmem:[%s1104_s26 + $0xe0] sm:$0xf]  ;;  %v924_v49 = vld [vmem:[%s1104_s26 + $0x10c] sm:$0xf0]  ;;  %v918_v50 = vld [vmem:[%s1104_s26 + $0xe4] sm:$0xf]  ;;  %v874_v51 = vor.u32 %v919_v40, %v871_v45  ;;  %v754_v58 = vor.u32 %v892_v43, %v751_v44 }
  0x51   : > { %v863_v52 = vld [vmem:[%s1104_s26 + $0x110] sm:$0xf0]  ;;  %v821_v53 = vld [vmem:[%s1104_s26 + $0x88] sm:$0xf]  ;;  %v913_v54 = vld [vmem:[%s1104_s26 + $0xb4] sm:$0xf0]  ;;  %v862_v59 = vor.u32 %v924_v49, %v861_v48 }
  0x52   : > { %542 = vmatpush.bf16.msrb.mxu2 %v806_v26  ;;  %v907_v56 = vld [vmem:[%s1104_s26 + $0x8c] sm:$0xf]  ;;  %v823_v57 = vld [vmem:[%s1104_s26 + $0xb8] sm:$0xf0]  ;;  %v866_v60 = vor.u32 %v918_v50, %v863_v52  ;;  %v822_v61 = vor.u32 %v913_v54, %v821_v53  ;;  %v813_v62 = vld [vmem:[%s1104_s26 + $0x80] sm:$0xf] }
  0x53   : > { %555 = vmatpush.bf16.msrb.mxu3 %v810_v30  ;;  %516 = vmatpush.bf16.msrb.mxu0 %v798_v37  ;;  %v912_v63 = vld [vmem:[%s1104_s26 + $0xac] sm:$0xf0]  ;;  %v826_v0 = vor.u32 %v907_v56, %v823_v57  ;;  %v906_v1 = vld [vmem:[%s1104_s26 + $0x84] sm:$0xf]  ;;  %v815_v2 = vld [vmem:[%s1104_s26 + $0xb0] sm:$0xf0] }
  0x54   : > { %529 = vmatpush.bf16.msrb.mxu1 %v802_v41  ;;  %v814_v3 = vor.u32 %v912_v63, %v813_v62  ;;  %v773_v4 = vld [vmem:[%s1104_s26 + $0x28] sm:$0xf]  ;;  %v901_v5 = vld [vmem:[%s1104_s26 + $0x54] sm:$0xf0]  ;;  %v895_v6 = vld [vmem:[%s1104_s26 + $0x2c] sm:$0xf]  ;;  %v818_v7 = vor.u32 %v906_v1, %v815_v2 }
  0x55   : > { %v775_v8 = vld [vmem:[%s1104_s26 + $0x58] sm:$0xf0]  ;;  %v765_v9 = vld [vmem:[%s1104_s26 + $0x20] sm:$0xf]  ;;  %v900_v10 = vld [vmem:[%s1104_s26 + $0x4c] sm:$0xf0]  ;;  %v774_v14 = vor.u32 %v901_v5, %v773_v4 }
  0x56   : > { %543 = vmatpush.bf16.msrb.mxu2 %v758_v42  ;;  %v894_v12 = vld [vmem:[%s1104_s26 + $0x24] sm:$0xf]  ;;  %v767_v13 = vld [vmem:[%s1104_s26 + $0x50] sm:$0xf0]  ;;  %v778_v15 = vor.u32 %v895_v6, %v775_v8  ;;  %v766_v16 = vor.u32 %v900_v10, %v765_v9  ;;  %s730_s30 = sshll.u32 %s1243_s29, 3 }
  0x57   : > { %556 = vmatpush.bf16.msrb.mxu3 %v762_v46  ;;  %517 = vmatpush.bf16.msrb.mxu0 %v750_v55  ;;  %v770_v17 = vor.u32 %v894_v12, %v767_v13  ;;  %s1212_s5 = scalar_lea.vmem %s1238_s2, %s730_s30 }
  0x58   : > { %530 = vmatpush.bf16.msrb.mxu1 %v754_v58 }
  0x5a   : > { %593 = vmatpush.bf16.msra.mxu2 %v870_v47 }
  0x5b   : > { %606 = vmatpush.bf16.msra.mxu3 %v874_v51  ;;  %567 = vmatpush.bf16.msra.mxu0 %v862_v59 }
  0x5c   : > { %580 = vmatpush.bf16.msra.mxu1 %v866_v60  ;;  %879 = vmatmul.msk.bf16.vlgmr.msrb.gmra.mxu0 %vm454_vm0, %v1136_v11 }
  0x5d   : > { %880 = vmatmul.msk.bf16.vlgmr.msrb.gmra.mxu1 %vm454_vm0, %v1136_v11  ;;  %881 = vmatmul.msk.bf16.vlgmr.msrb.gmra.mxu2 %vm454_vm0, %v1136_v11 }
  0x5e   : > { %594 = vmatpush.bf16.msra.mxu2 %v822_v61  ;;  %882 = vmatmul.msk.bf16.vlgmr.msrb.gmra.mxu3 %vm454_vm0, %v1136_v11 }
  0x5f   : > { %607 = vmatpush.bf16.msra.mxu3 %v826_v0  ;;  %568 = vmatpush.bf16.msra.mxu0 %v814_v3 }
  0x60   : > { %581 = vmatpush.bf16.msra.mxu1 %v818_v7 }
  0x62   : > { %595 = vmatpush.bf16.msra.mxu2 %v774_v14 }
  0x63   : > { %608 = vmatpush.bf16.msra.mxu3 %v778_v15  ;;  %569 = vmatpush.bf16.msra.mxu0 %v766_v16 }
  0x64   : > { %582 = vmatpush.bf16.msra.mxu1 %v770_v17 }
  0x6c   : > { %883 = vmatmul.msk.bf16.vlgmr.msra.gmra.mxu0 %vm454_vm0, %v1136_v11 }
  0x6d   : > { %884 = vmatmul.msk.bf16.vlgmr.msra.gmra.mxu1 %vm454_vm0, %v1136_v11  ;;  %885 = vmatmul.msk.bf16.vlgmr.msra.gmra.mxu2 %vm454_vm0, %v1136_v11 }
  0x6e   : > { %886 = vmatmul.msk.bf16.vlgmr.msra.gmra.mxu3 %vm454_vm0, %v1136_v11 }
  0xc9   : > { %v467_v18 = vpop.f32.mrf.mxu0 }
  0xca   : > { %vm614_vm1 = vcmp.gt.f32.partialorder %v467_v18, 0.0  ;;  %v626_v19 = vmul.f32 0.2, %v467_v18  ;;  %v480_v20 = vpop.f32.mrf.mxu1 }
  0xcb   : > { %vm615_vm2 = vcmp.gt.f32.partialorder %v480_v20, 0.0  ;;  %v627_v21 = vmul.f32 0.2, %v480_v20 }
  0xcc   : > { %v638_v11 = vsel %vm614_vm1, %v467_v18, %v626_v19 }
  0xcd   : > { %650 = vst [vmem:[%s1212_s5] sm:$0xff] %v638_v11  ;;  %v639_v22 = vsel %vm615_vm2, %v480_v20, %v627_v21 }
  0xce   : > { %651 = vst [vmem:[%s1212_s5 + $0x8] sm:$0xff] %v639_v22 }
  0xd0   : > { %v493_v23 = vpop.f32.mrf.mxu2 }
  0xd1   : > { %vm616_vm3 = vcmp.gt.f32.partialorder %v493_v23, 0.0  ;;  %v628_v24 = vmul.f32 0.2, %v493_v23  ;;  %v506_v25 = vpop.f32.mrf.mxu3  ;;  %v469_v26 = vpop.f32.mrf.mxu0 }
  0xd2   : > { %vm617_vm4 = vcmp.gt.f32.partialorder %v506_v25, 0.0  ;;  %v629_v27 = vmul.f32 0.2, %v506_v25  ;;  %v482_v28 = vpop.f32.mrf.mxu1 }
  0xd3   : > { %v640_v29 = vsel %vm616_vm3, %v493_v23, %v628_v24 }
  0xd4   : > { %652 = vst [vmem:[%s1212_s5 + $0x10] sm:$0xff] %v640_v29  ;;  %v641_v30 = vsel %vm617_vm4, %v506_v25, %v629_v27 }
  0xd5   : > { %653 = vst [vmem:[%s1212_s5 + $0x18] sm:$0xff] %v641_v30 }
  0xd8   : > { %v495_v31 = vpop.f32.mrf.mxu2 }
  0xd9   : > { %v508_v32 = vpop.f32.mrf.mxu3  ;;  %v519_v33 = vpop.f32.mrf.mxu0 }
  0xda   : > { %vm618_vm5 = vcmp.gt.f32.partialorder %v519_v33, 0.0  ;;  %v630_v34 = vmul.f32 0.2, %v519_v33  ;;  %v532_v35 = vpop.f32.mrf.mxu1 }
  0xdb   : > { %vm619_vm6 = vcmp.gt.f32.partialorder %v532_v35, 0.0  ;;  %v631_v36 = vmul.f32 0.2, %v532_v35 }
  0xdc   : > { %v642_v37 = vsel %vm618_vm5, %v519_v33, %v630_v34 }
  0xdd   : > { %654 = vst [vmem:[%s1212_s5 + $0x20] sm:$0xff] %v642_v37  ;;  %v643_v38 = vsel %vm619_vm6, %v532_v35, %v631_v36 }
  0xde   : > { %655 = vst [vmem:[%s1212_s5 + $0x28] sm:$0xff] %v643_v38 }
  0xe0   : > { %v545_v39 = vpop.f32.mrf.mxu2 }
  0xe1   : > { %vm620_vm7 = vcmp.gt.f32.partialorder %v545_v39, 0.0  ;;  %v632_v40 = vmul.f32 0.2, %v545_v39  ;;  %v558_v41 = vpop.f32.mrf.mxu3  ;;  %v521_v42 = vpop.f32.mrf.mxu0 }
  0xe2   : > { %vm621_vm8 = vcmp.gt.f32.partialorder %v558_v41, 0.0  ;;  %v633_v43 = vmul.f32 0.2, %v558_v41  ;;  %v534_v44 = vpop.f32.mrf.mxu1 }
  0xe3   : > { %v644_v45 = vsel %vm620_vm7, %v545_v39, %v632_v40 }
  0xe4   : > { %656 = vst [vmem:[%s1212_s5 + $0x30] sm:$0xff] %v644_v45  ;;  %v645_v46 = vsel %vm621_vm8, %v558_v41, %v633_v43 }
  0xe5   : > { %657 = vst [vmem:[%s1212_s5 + $0x38] sm:$0xff] %v645_v46 }
  0xe8   : > { %v547_v47 = vpop.f32.mrf.mxu2 }
  0xe9   : > { %v560_v48 = vpop.f32.mrf.mxu3  ;;  %v571_v49 = vpop.f32.mrf.mxu0 }
  0xea   : > { %vm622_vm9 = vcmp.gt.f32.partialorder %v571_v49, 0.0  ;;  %v634_v50 = vmul.f32 0.2, %v571_v49  ;;  %v584_v51 = vpop.f32.mrf.mxu1 }
  0xeb   : > { %vm623_vm10 = vcmp.gt.f32.partialorder %v584_v51, 0.0  ;;  %v635_v52 = vmul.f32 0.2, %v584_v51 }
  0xec   : > { %v646_v53 = vsel %vm622_vm9, %v571_v49, %v634_v50 }
  0xed   : > { %658 = vst [vmem:[%s1212_s5 + $0x40] sm:$0xff] %v646_v53  ;;  %v647_v54 = vsel %vm623_vm10, %v584_v51, %v635_v52 }
  0xee   : > { %659 = vst [vmem:[%s1212_s5 + $0x48] sm:$0xff] %v647_v54 }
  0xf0   : > { %v597_v55 = vpop.f32.mrf.mxu2 }
  0xf1   : > { %vm624_vm11 = vcmp.gt.f32.partialorder %v597_v55, 0.0  ;;  %v636_v56 = vmul.f32 0.2, %v597_v55  ;;  %v610_v57 = vpop.f32.mrf.mxu3  ;;  %v573_v58 = vpop.f32.mrf.mxu0 }
  0xf2   : > { %vm625_vm12 = vcmp.gt.f32.partialorder %v610_v57, 0.0  ;;  %v637_v59 = vmul.f32 0.2, %v610_v57  ;;  %v586_v60 = vpop.f32.mrf.mxu1 }
  0xf3   : > { %v648_v61 = vsel %vm624_vm11, %v597_v55, %v636_v56 }
  0xf4   : > { %660 = vst [vmem:[%s1212_s5 + $0x50] sm:$0xff] %v648_v61  ;;  %v649_v62 = vsel %vm625_vm12, %v610_v57, %v637_v59 }
  0xf5   : > { %661 = vst [vmem:[%s1212_s5 + $0x58] sm:$0xff] %v649_v62 }
  0xf8   : > { %v599_v63 = vpop.f32.mrf.mxu2 }
  0xf9   : > { %v612_v0 = vpop.f32.mrf.mxu3 }
  0xfa PF: > { %p9_p9 = scmp.ge.s32.totalorder %s1008_s13, 4   ;;  %s1239_s9 = smov %s970_s10 }
  0xfb   : > { %s1240_s10 = smov %s1017_s16  ;;  %s1241_s11 = smov %s1008_s13 }
  0xfc   :  { %11 = sbr.rel (!%p9_p9) target bundleno = 2 (0x2), region = 86 }

// kernel: discriminator_forward.5
= control target key start
LH: loop header
LB: loop body
LE: loop exit
PB: predicated region body
PF: predicated region fallthrough
CT: control target
= control target key end

     0   :  { %s1038_s1 = inlined_call_operand.vmem [shape: bf16[128,768], index: 1, kind: input, shape index: {}]   ;;  %s1039_s0 = inlined_call_operand.vmem [shape: bf16[16,128], index: 0, kind: input, shape index: {}]   ;;  %s1040_s2 = inlined_call_operand.vmem [shape: f32[16,768], index: 2, kind: output, shape index: {}]  }
   0x1   :  { %v617_v0 = vld [vmem:[%s1038_s1 + $0x150] sm:$0xf]  ;;  %v685_v1 = vld [vmem:[%s1038_s1 + $0x164] sm:$0xf0]  ;;  %v682_v2 = vld [vmem:[%s1038_s1 + $0x154] sm:$0xf] }
   0x2   :  { %v618_v3 = vor.u32 %v685_v1, %v617_v0  ;;  %v619_v4 = vld [vmem:[%s1038_s1 + $0x168] sm:$0xf0]  ;;  %v593_v5 = vld [vmem:[%s1038_s1 + $0x120] sm:$0xf]  ;;  %v679_v6 = vld [vmem:[%s1038_s1 + $0x134] sm:$0xf0] }
   0x3   :  { %v622_v7 = vor.u32 %v682_v2, %v619_v4  ;;  %v676_v8 = vld [vmem:[%s1038_s1 + $0x124] sm:$0xf]  ;;  %v595_v9 = vld [vmem:[%s1038_s1 + $0x138] sm:$0xf0]  ;;  %v594_v10 = vor.u32 %v679_v6, %v593_v5  ;;  %v569_v12 = vld [vmem:[%s1038_s1 + $0xf0] sm:$0xf] }
   0x4   :  { %307 = vmatpush.bf16.msra.mxu0 %v618_v3  ;;  %v598_v11 = vor.u32 %v676_v8, %v595_v9  ;;  %v673_v13 = vld [vmem:[%s1038_s1 + $0x104] sm:$0xf0]  ;;  %v670_v14 = vld [vmem:[%s1038_s1 + $0xf4] sm:$0xf]  ;;  %v571_v15 = vld [vmem:[%s1038_s1 + $0x108] sm:$0xf0] }
   0x5   :  { %321 = vmatpush.bf16.msra.mxu1 %v622_v7  ;;  %v625_v16 = vld [vmem:[%s1038_s1 + $0x158] sm:$0xf]  ;;  %v686_v17 = vld [vmem:[%s1038_s1 + $0x16c] sm:$0xf0]  ;;  %v683_v19 = vld [vmem:[%s1038_s1 + $0x15c] sm:$0xf]  ;;  %v570_v21 = vor.u32 %v673_v13, %v569_v12  ;;  %v574_v25 = vor.u32 %v670_v14, %v571_v15 }
   0x6   :  { %v626_v18 = vor.u32 %v686_v17, %v625_v16  ;;  %v627_v20 = vld [vmem:[%s1038_s1 + $0x170] sm:$0xf0]  ;;  %v545_v22 = vld [vmem:[%s1038_s1 + $0xc0] sm:$0xf]  ;;  %v667_v23 = vld [vmem:[%s1038_s1 + $0xd4] sm:$0xf0] }
   0x7   :  { %v630_v24 = vor.u32 %v683_v19, %v627_v20  ;;  %v601_v26 = vld [vmem:[%s1038_s1 + $0x128] sm:$0xf]  ;;  %v680_v27 = vld [vmem:[%s1038_s1 + $0x13c] sm:$0xf0]  ;;  %v677_v28 = vld [vmem:[%s1038_s1 + $0x12c] sm:$0xf]  ;;  %v546_v35 = vor.u32 %v667_v23, %v545_v22 }
   0x8   :  { %308 = vmatpush.bf16.msra.mxu0 %v594_v10  ;;  %335 = vmatpush.bf16.msra.mxu2 %v626_v18  ;;  %v664_v29 = vld [vmem:[%s1038_s1 + $0xc4] sm:$0xf]  ;;  %v547_v30 = vld [vmem:[%s1038_s1 + $0xd8] sm:$0xf0]  ;;  %v602_v31 = vor.u32 %v680_v27, %v601_v26  ;;  %v577_v34 = vld [vmem:[%s1038_s1 + $0xf8] sm:$0xf] }
   0x9   :  { %322 = vmatpush.bf16.msra.mxu1 %v598_v11  ;;  %349 = vmatpush.bf16.msra.mxu3 %v630_v24  ;;  %v603_v32 = vld [vmem:[%s1038_s1 + $0x140] sm:$0xf0]  ;;  %v674_v36 = vld [vmem:[%s1038_s1 + $0x10c] sm:$0xf0]  ;;  %v671_v37 = vld [vmem:[%s1038_s1 + $0xfc] sm:$0xf]  ;;  %v550_v39 = vor.u32 %v664_v29, %v547_v30 }
   0xa   :  { %v606_v33 = vor.u32 %v677_v28, %v603_v32  ;;  %v579_v38 = vld [vmem:[%s1038_s1 + $0x110] sm:$0xf0]  ;;  %v521_v40 = vld [vmem:[%s1038_s1 + $0x90] sm:$0xf]  ;;  %v661_v41 = vld [vmem:[%s1038_s1 + $0xa4] sm:$0xf0]  ;;  %v578_v43 = vor.u32 %v674_v36, %v577_v34 }
   0xb   :  { %v658_v42 = vld [vmem:[%s1038_s1 + $0x94] sm:$0xf]  ;;  %v523_v44 = vld [vmem:[%s1038_s1 + $0xa8] sm:$0xf0]  ;;  %v582_v45 = vor.u32 %v671_v37, %v579_v38  ;;  %v553_v46 = vld [vmem:[%s1038_s1 + $0xc8] sm:$0xf]  ;;  %v522_v50 = vor.u32 %v661_v41, %v521_v40 }
   0xc   :  { %309 = vmatpush.bf16.msra.mxu0 %v570_v21  ;;  %336 = vmatpush.bf16.msra.mxu2 %v602_v31  ;;  %v668_v47 = vld [vmem:[%s1038_s1 + $0xdc] sm:$0xf0]  ;;  %v665_v48 = vld [vmem:[%s1038_s1 + $0xcc] sm:$0xf]  ;;  %v555_v49 = vld [vmem:[%s1038_s1 + $0xe0] sm:$0xf0]  ;;  %v526_v51 = vor.u32 %v658_v42, %v523_v44 }
   0xd   :  { %323 = vmatpush.bf16.msra.mxu1 %v574_v25  ;;  %350 = vmatpush.bf16.msra.mxu3 %v606_v33  ;;  %v497_v52 = vld [vmem:[%s1038_s1 + $0x60] sm:$0xf]  ;;  %v655_v53 = vld [vmem:[%s1038_s1 + $0x74] sm:$0xf0]  ;;  %v652_v54 = vld [vmem:[%s1038_s1 + $0x64] sm:$0xf]  ;;  %v554_v55 = vor.u32 %v668_v47, %v553_v46  ;;  %v558_v57 = vor.u32 %v665_v48, %v555_v49 }
   0xe   :  { %v499_v56 = vld [vmem:[%s1038_s1 + $0x78] sm:$0xf0]  ;;  %v529_v58 = vld [vmem:[%s1038_s1 + $0x98] sm:$0xf]  ;;  %v662_v59 = vld [vmem:[%s1038_s1 + $0xac] sm:$0xf0]  ;;  %v498_v62 = vor.u32 %v655_v53, %v497_v52 }
   0xf   :  { %v659_v60 = vld [vmem:[%s1038_s1 + $0x9c] sm:$0xf]  ;;  %v531_v61 = vld [vmem:[%s1038_s1 + $0xb0] sm:$0xf0]  ;;  %v502_v63 = vor.u32 %v652_v54, %v499_v56  ;;  %v473_v0 = vld [vmem:[%s1038_s1 + $0x30] sm:$0xf]  ;;  %v530_v3 = vor.u32 %v662_v59, %v529_v58 }
  0x10   :  { %310 = vmatpush.bf16.msra.mxu0 %v546_v35  ;;  %337 = vmatpush.bf16.msra.mxu2 %v578_v43  ;;  %v649_v1 = vld [vmem:[%s1038_s1 + $0x44] sm:$0xf0]  ;;  %v646_v2 = vld [vmem:[%s1038_s1 + $0x34] sm:$0xf]  ;;  %v475_v4 = vld [vmem:[%s1038_s1 + $0x48] sm:$0xf0]  ;;  %v534_v5 = vor.u32 %v659_v60, %v531_v61 }
  0x11   :  { %324 = vmatpush.bf16.msra.mxu1 %v550_v39  ;;  %351 = vmatpush.bf16.msra.mxu3 %v582_v45  ;;  %v505_v6 = vld [vmem:[%s1038_s1 + $0x68] sm:$0xf]  ;;  %v656_v7 = vld [vmem:[%s1038_s1 + $0x7c] sm:$0xf0]  ;;  %v653_v8 = vld [vmem:[%s1038_s1 + $0x6c] sm:$0xf]  ;;  %v474_v10 = vor.u32 %v649_v1, %v473_v0  ;;  %v478_v12 = vor.u32 %v646_v2, %v475_v4 }
  0x12   :  { %v507_v9 = vld [vmem:[%s1038_s1 + $0x80] sm:$0xf0]  ;;  %v449_v11 = vld [vmem:[%s1038_s1] sm:$0xf]  ;;  %v643_v13 = vld [vmem:[%s1038_s1 + $0x14] sm:$0xf0]  ;;  %v506_v16 = vor.u32 %v656_v7, %v505_v6 }
  0x13   :  { %v640_v14 = vld [vmem:[%s1038_s1 + $0x4] sm:$0xf]  ;;  %v451_v15 = vld [vmem:[%s1038_s1 + $0x18] sm:$0xf0]  ;;  %v633_v17 = vld [vmem:[%s1038_s1 + $0x160] sm:$0xf]  ;;  %v510_v20 = vor.u32 %v653_v8, %v507_v9  ;;  %v450_v24 = vor.u32 %v643_v13, %v449_v11 }
  0x14   :  { %311 = vmatpush.bf16.msra.mxu0 %v522_v50  ;;  %338 = vmatpush.bf16.msra.mxu2 %v554_v55  ;;  %v687_v18 = vld [vmem:[%s1038_s1 + $0x174] sm:$0xf0]  ;;  %v684_v19 = vld [vmem:[%s1038_s1 + $0x164] sm:$0xf]  ;;  %v635_v21 = vld [vmem:[%s1038_s1 + $0x178] sm:$0xf0]  ;;  %v454_v27 = vor.u32 %v640_v14, %v451_v15 }
  0x15   :  { %325 = vmatpush.bf16.msra.mxu1 %v526_v51  ;;  %352 = vmatpush.bf16.msra.mxu3 %v558_v57  ;;  %v481_v22 = vld [vmem:[%s1038_s1 + $0x38] sm:$0xf]  ;;  %v650_v23 = vld [vmem:[%s1038_s1 + $0x4c] sm:$0xf0]  ;;  %v647_v25 = vld [vmem:[%s1038_s1 + $0x3c] sm:$0xf]  ;;  %v634_v28 = vor.u32 %v687_v18, %v633_v17  ;;  %v638_v30 = vor.u32 %v684_v19, %v635_v21 }
  0x16   :  { %v483_v26 = vld [vmem:[%s1038_s1 + $0x50] sm:$0xf0]  ;;  %v609_v29 = vld [vmem:[%s1038_s1 + $0x130] sm:$0xf]  ;;  %v681_v31 = vld [vmem:[%s1038_s1 + $0x144] sm:$0xf0]  ;;  %v482_v34 = vor.u32 %v650_v23, %v481_v22 }
  0x17   :  { %v678_v32 = vld [vmem:[%s1038_s1 + $0x134] sm:$0xf]  ;;  %v611_v33 = vld [vmem:[%s1038_s1 + $0x148] sm:$0xf0]  ;;  %v910_v35 = vld [vmem:[%s1039_s0] sm:$0xff]  ;;  %v486_v36 = vor.u32 %v647_v25, %v483_v26  ;;  %v610_v41 = vor.u32 %v681_v31, %v609_v29 }
  0x18   :  { %312 = vmatpush.bf16.msra.mxu0 %v498_v62  ;;  %339 = vmatpush.bf16.msra.mxu2 %v530_v3  ;;  %v457_v37 = vld [vmem:[%s1038_s1 + $0x8] sm:$0xf]  ;;  %v644_v38 = vld [vmem:[%s1038_s1 + $0x1c] sm:$0xf0]  ;;  %v641_v39 = vld [vmem:[%s1038_s1 + $0xc] sm:$0xf]  ;;  %v614_v42 = vor.u32 %v678_v32, %v611_v33 }
  0x19   :  { %326 = vmatpush.bf16.msra.mxu1 %v502_v63  ;;  %353 = vmatpush.bf16.msra.mxu3 %v534_v5  ;;  %v459_v40 = vld [vmem:[%s1038_s1 + $0x20] sm:$0xf0]  ;;  %v585_v43 = vld [vmem:[%s1038_s1 + $0x100] sm:$0xf]  ;;  %v675_v44 = vld [vmem:[%s1038_s1 + $0x114] sm:$0xf0]  ;;  %v458_v45 = vor.u32 %v644_v38, %v457_v37 }
  0x1a   :  { %v672_v46 = vld [vmem:[%s1038_s1 + $0x104] sm:$0xf]  ;;  %v587_v47 = vld [vmem:[%s1038_s1 + $0x118] sm:$0xf0]  ;;  %v462_v48 = vor.u32 %v641_v39, %v459_v40  ;;  %v586_v49 = vor.u32 %v675_v44, %v585_v43  ;;  %v561_v51 = vld [vmem:[%s1038_s1 + $0xd0] sm:$0xf] }
  0x1b   :  { %v590_v50 = vor.u32 %v672_v46, %v587_v47  ;;  %v669_v52 = vld [vmem:[%s1038_s1 + $0xe4] sm:$0xf0]  ;;  %v666_v53 = vld [vmem:[%s1038_s1 + $0xd4] sm:$0xf]  ;;  %v563_v54 = vld [vmem:[%s1038_s1 + $0xe8] sm:$0xf0] }
  0x1c   :  { %313 = vmatpush.bf16.msra.mxu0 %v474_v10  ;;  %340 = vmatpush.bf16.msra.mxu2 %v506_v16  ;;  %v562_v55 = vor.u32 %v669_v52, %v561_v51  ;;  %v566_v56 = vor.u32 %v666_v53, %v563_v54  ;;  %v537_v57 = vld [vmem:[%s1038_s1 + $0xa0] sm:$0xf]  ;;  %v663_v58 = vld [vmem:[%s1038_s1 + $0xb4] sm:$0xf0]  ;;  %v660_v59 = vld [vmem:[%s1038_s1 + $0xa4] sm:$0xf] }
  0x1d   :  { %327 = vmatpush.bf16.msra.mxu1 %v478_v12  ;;  %354 = vmatpush.bf16.msra.mxu3 %v510_v20  ;;  %v539_v60 = vld [vmem:[%s1038_s1 + $0xb8] sm:$0xf0]  ;;  %v538_v61 = vor.u32 %v663_v58, %v537_v57  ;;  %v513_v63 = vld [vmem:[%s1038_s1 + $0x70] sm:$0xf]  ;;  %v657_v0 = vld [vmem:[%s1038_s1 + $0x84] sm:$0xf0] }
  0x1e   :  { %v542_v62 = vor.u32 %v660_v59, %v539_v60  ;;  %v654_v1 = vld [vmem:[%s1038_s1 + $0x74] sm:$0xf]  ;;  %v515_v2 = vld [vmem:[%s1038_s1 + $0x88] sm:$0xf0]  ;;  %v514_v3 = vor.u32 %v657_v0, %v513_v63  ;;  %v489_v5 = vld [vmem:[%s1038_s1 + $0x40] sm:$0xf] }
  0x1f   :  { %v518_v4 = vor.u32 %v654_v1, %v515_v2  ;;  %v651_v6 = vld [vmem:[%s1038_s1 + $0x54] sm:$0xf0]  ;;  %v648_v7 = vld [vmem:[%s1038_s1 + $0x44] sm:$0xf]  ;;  %v491_v8 = vld [vmem:[%s1038_s1 + $0x58] sm:$0xf0] }
  0x20   :  { %314 = vmatpush.bf16.msra.mxu0 %v450_v24  ;;  %341 = vmatpush.bf16.msra.mxu2 %v482_v34  ;;  %v490_v9 = vor.u32 %v651_v6, %v489_v5  ;;  %v494_v10 = vor.u32 %v648_v7, %v491_v8  ;;  %v465_v11 = vld [vmem:[%s1038_s1 + $0x10] sm:$0xf]  ;;  %v645_v12 = vld [vmem:[%s1038_s1 + $0x24] sm:$0xf0]  ;;  %v642_v13 = vld [vmem:[%s1038_s1 + $0x14] sm:$0xf] }
  0x21   :  { %328 = vmatpush.bf16.msra.mxu1 %v454_v27  ;;  %355 = vmatpush.bf16.msra.mxu3 %v486_v36  ;;  %v467_v14 = vld [vmem:[%s1038_s1 + $0x28] sm:$0xf0]  ;;  %v466_v15 = vor.u32 %v645_v12, %v465_v11 }
  0x22   :  { %v470_v16 = vor.u32 %v642_v13, %v467_v14 }
  0x23   :  { %315 = vmatmul.bf16.vlgmr.msra.gmra.mxu0 %v910_v35 }
  0x24   :  { %363 = vmatpush.bf16.msrb.mxu0 %v634_v28  ;;  %329 = vmatmul.bf16.vlgmr.msra.gmra.mxu1 %v910_v35 }
  0x25   :  { %377 = vmatpush.bf16.msrb.mxu1 %v638_v30  ;;  %342 = vmatpush.bf16.msra.mxu2 %v458_v45 }
  0x26   :  { %356 = vmatpush.bf16.msra.mxu3 %v462_v48 }
  0x28   :  { %364 = vmatpush.bf16.msrb.mxu0 %v610_v41  ;;  %343 = vmatmul.bf16.vlgmr.msra.gmra.mxu2 %v910_v35 }
  0x29   :  { %378 = vmatpush.bf16.msrb.mxu1 %v614_v42  ;;  %357 = vmatmul.bf16.vlgmr.msra.gmra.mxu3 %v910_v35 }
  0x2c   :  { %365 = vmatpush.bf16.msrb.mxu0 %v586_v49 }
  0x2d   :  { %379 = vmatpush.bf16.msrb.mxu1 %v590_v50 }
  0x30   :  { %366 = vmatpush.bf16.msrb.mxu0 %v562_v55 }
  0x31   :  { %380 = vmatpush.bf16.msrb.mxu1 %v566_v56 }
  0x34   :  { %367 = vmatpush.bf16.msrb.mxu0 %v538_v61 }
  0x35   :  { %381 = vmatpush.bf16.msrb.mxu1 %v542_v62 }
  0x38   :  { %368 = vmatpush.bf16.msrb.mxu0 %v514_v3 }
  0x39   :  { %382 = vmatpush.bf16.msrb.mxu1 %v518_v4 }
  0x3c   :  { %369 = vmatpush.bf16.msrb.mxu0 %v490_v9 }
  0x3d   :  { %383 = vmatpush.bf16.msrb.mxu1 %v494_v10 }
  0x40   :  { %370 = vmatpush.bf16.msrb.mxu0 %v466_v15 }
  0x41   :  { %384 = vmatpush.bf16.msrb.mxu1 %v470_v16 }
  0x43   :  { %371 = vmatmul.bf16.vlgmr.msrb.gmra.mxu0 %v910_v35 }
  0x44   :  { %385 = vmatmul.bf16.vlgmr.msrb.gmra.mxu1 %v910_v35 }
  0xa0   :  { %v316_v17 = vpop.f32.mrf.mxu0 }
  0xa1   :  { %vm391_vm0 = vcmp.gt.f32.partialorder %v316_v17, 0.0  ;;  %v403_v18 = vmul.f32 0.2, %v316_v17  ;;  %v330_v19 = vpop.f32.mrf.mxu1 }
  0xa2   :  { %vm392_vm1 = vcmp.gt.f32.partialorder %v330_v19, 0.0  ;;  %v404_v20 = vmul.f32 0.2, %v330_v19 }
  0xa3   :  { %v415_v21 = vsel %vm391_vm0, %v316_v17, %v403_v18 }
  0xa4   :  { %427 = vst [vmem:[%s1040_s2] sm:$0xff] %v415_v21  ;;  %v416_v22 = vsel %vm392_vm1, %v330_v19, %v404_v20 }
  0xa5   :  { %428 = vst [vmem:[%s1040_s2 + $0x8] sm:$0xff] %v416_v22 }
  0xa8   :  { %v318_v23 = vpop.f32.mrf.mxu0 }
  0xa9   :  { %vm397_vm2 = vcmp.gt.f32.partialorder %v318_v23, 0.0  ;;  %v409_v24 = vmul.f32 0.2, %v318_v23  ;;  %v332_v25 = vpop.f32.mrf.mxu1 }
  0xaa   :  { %vm398_vm3 = vcmp.gt.f32.partialorder %v332_v25, 0.0  ;;  %v410_v26 = vmul.f32 0.2, %v332_v25 }
  0xab   :  { %v421_v27 = vsel %vm397_vm2, %v318_v23, %v409_v24  ;;  %v344_v29 = vpop.f32.mrf.mxu2 }
  0xac   :  { %433 = vst [vmem:[%s1040_s2 + $0x30] sm:$0xff] %v421_v27  ;;  %v422_v28 = vsel %vm398_vm3, %v332_v25, %v410_v26  ;;  %vm393_vm4 = vcmp.gt.f32.partialorder %v344_v29, 0.0  ;;  %v405_v30 = vmul.f32 0.2, %v344_v29  ;;  %v358_v31 = vpop.f32.mrf.mxu3 }
  0xad   :  { %434 = vst [vmem:[%s1040_s2 + $0x38] sm:$0xff] %v422_v28  ;;  %vm394_vm5 = vcmp.gt.f32.partialorder %v358_v31, 0.0  ;;  %v406_v32 = vmul.f32 0.2, %v358_v31 }
  0xae   :  { %v417_v33 = vsel %vm393_vm4, %v344_v29, %v405_v30 }
  0xaf   :  { %429 = vst [vmem:[%s1040_s2 + $0x10] sm:$0xff] %v417_v33  ;;  %v418_v34 = vsel %vm394_vm5, %v358_v31, %v406_v32 }
  0xb0   :  { %430 = vst [vmem:[%s1040_s2 + $0x18] sm:$0xff] %v418_v34 }
  0xb3   :  { %v346_v35 = vpop.f32.mrf.mxu2 }
  0xb4   :  { %vm399_vm6 = vcmp.gt.f32.partialorder %v346_v35, 0.0  ;;  %v411_v36 = vmul.f32 0.2, %v346_v35  ;;  %v360_v37 = vpop.f32.mrf.mxu3 }
  0xb5   :  { %vm400_vm7 = vcmp.gt.f32.partialorder %v360_v37, 0.0  ;;  %v412_v38 = vmul.f32 0.2, %v360_v37 }
  0xb6   :  { %v423_v39 = vsel %vm399_vm6, %v346_v35, %v411_v36 }
  0xb7   :  { %435 = vst [vmem:[%s1040_s2 + $0x40] sm:$0xff] %v423_v39  ;;  %v424_v40 = vsel %vm400_vm7, %v360_v37, %v412_v38 }
  0xb8   :  { %436 = vst [vmem:[%s1040_s2 + $0x48] sm:$0xff] %v424_v40 }
  0xc0   :  { %v372_v41 = vpop.f32.mrf.mxu0 }
  0xc1   :  { %vm395_vm8 = vcmp.gt.f32.partialorder %v372_v41, 0.0  ;;  %v407_v42 = vmul.f32 0.2, %v372_v41  ;;  %v386_v43 = vpop.f32.mrf.mxu1 }
  0xc2   :  { %vm396_vm9 = vcmp.gt.f32.partialorder %v386_v43, 0.0  ;;  %v408_v44 = vmul.f32 0.2, %v386_v43 }
  0xc3   :  { %v419_v45 = vsel %vm395_vm8, %v372_v41, %v407_v42 }
  0xc4   :  { %431 = vst [vmem:[%s1040_s2 + $0x20] sm:$0xff] %v419_v45  ;;  %v420_v46 = vsel %vm396_vm9, %v386_v43, %v408_v44 }
  0xc5   :  { %432 = vst [vmem:[%s1040_s2 + $0x28] sm:$0xff] %v420_v46 }
  0xc8   :  { %v374_v47 = vpop.f32.mrf.mxu0 }
  0xc9   :  { %vm401_vm10 = vcmp.gt.f32.partialorder %v374_v47, 0.0  ;;  %v413_v48 = vmul.f32 0.2, %v374_v47  ;;  %v388_v49 = vpop.f32.mrf.mxu1 }
  0xca   :  { %vm402_vm11 = vcmp.gt.f32.partialorder %v388_v49, 0.0  ;;  %v414_v50 = vmul.f32 0.2, %v388_v49 }
  0xcb   :  { %v425_v51 = vsel %vm401_vm10, %v374_v47, %v413_v48 }
  0xcc   :  { %437 = vst [vmem:[%s1040_s2 + $0x50] sm:$0xff] %v425_v51  ;;  %v426_v52 = vsel %vm402_vm11, %v388_v49, %v414_v50 }
  0xcd   :  { %438 = vst [vmem:[%s1040_s2 + $0x58] sm:$0xff] %v426_v52 }

// kernel: discriminator_forward.6
= control target key start
LH: loop header
LB: loop body
LE: loop exit
PB: predicated region body
PF: predicated region fallthrough
CT: control target
= control target key end

     0   :  { %vm328_vm2 = vcmask 523264   ;;  %s779_s1 = inlined_call_operand.vmem [shape: bf16[256,192], index: 1, kind: input, shape index: {}]   ;;  %s780_s0 = inlined_call_operand.vmem [shape: bf16[32,256], index: 0, kind: input, shape index: {}]   ;;  %s781_s2 = inlined_call_operand.vmem [shape: f32[32,192], index: 2, kind: output, shape index: {}]  }
   0x1   :  { %v414_v0 = vld [vmem:[%s779_s1 + $0x70] sm:$0xf]  ;;  %v503_v1 = vld [vmem:[%s779_s1 + $0x74] sm:$0xf0]  ;;  %v502_v5 = vld [vmem:[%s779_s1 + $0x74] sm:$0xf] }
   0x2   :  { %v478_v2 = vld [vmem:[%s779_s1 + $0xf0] sm:$0xf]  ;;  %v415_v3 = vor.u32 %v503_v1, %v414_v0  ;;  %v519_v4 = vld [vmem:[%s779_s1 + $0xf4] sm:$0xf0]  ;;  %v416_v6 = vld [vmem:[%s779_s1 + $0x78] sm:$0xf0] }
   0x3   :  { %v479_v7 = vor.u32 %v519_v4, %v478_v2  ;;  %v419_v8 = vor.u32 %v502_v5, %v416_v6  ;;  %v518_v9 = vld [vmem:[%s779_s1 + $0xf4] sm:$0xf]  ;;  %v480_v10 = vld [vmem:[%s779_s1 + $0xf8] sm:$0xf0]  ;;  %v406_v11 = vld [vmem:[%s779_s1 + $0x60] sm:$0xf] }
   0x4   :  { %227 = vmatpush.bf16.msra.mxu0 %v415_v3  ;;  %v483_v12 = vor.u32 %v518_v9, %v480_v10  ;;  %v501_v13 = vld [vmem:[%s779_s1 + $0x64] sm:$0xf0]  ;;  %v470_v14 = vld [vmem:[%s779_s1 + $0xe0] sm:$0xf]  ;;  %v500_v18 = vld [vmem:[%s779_s1 + $0x64] sm:$0xf] }
   0x5   :  { %v517_v15 = vld [vmem:[%s779_s1 + $0xe4] sm:$0xf0]  ;;  %246 = vmatpush.bf16.msra.mxu1 %v479_v7  ;;  %265 = vmatpush.bf16.msra.mxu2 %v419_v8  ;;  %v407_v16 = vor.u32 %v501_v13, %v406_v11  ;;  %v408_v19 = vld [vmem:[%s779_s1 + $0x68] sm:$0xf0]  ;;  %v516_v20 = vld [vmem:[%s779_s1 + $0xe4] sm:$0xf] }
   0x6   :  { %v471_v17 = vor.u32 %v517_v15, %v470_v14  ;;  %284 = vmatpush.bf16.msra.mxu3 %v483_v12  ;;  %v411_v21 = vor.u32 %v500_v18, %v408_v19  ;;  %v472_v22 = vld [vmem:[%s779_s1 + $0xe8] sm:$0xf0]  ;;  %v398_v23 = vld [vmem:[%s779_s1 + $0x50] sm:$0xf]  ;;  %v499_v24 = vld [vmem:[%s779_s1 + $0x54] sm:$0xf0] }
   0x7   :  { %v475_v25 = vor.u32 %v516_v20, %v472_v22  ;;  %v462_v26 = vld [vmem:[%s779_s1 + $0xd0] sm:$0xf]  ;;  %v515_v27 = vld [vmem:[%s779_s1 + $0xd4] sm:$0xf0]  ;;  %v498_v28 = vld [vmem:[%s779_s1 + $0x54] sm:$0xf]  ;;  %v399_v29 = vor.u32 %v499_v24, %v398_v23 }
   0x8   :  { %228 = vmatpush.bf16.msra.mxu0 %v407_v16  ;;  %v400_v30 = vld [vmem:[%s779_s1 + $0x58] sm:$0xf0]  ;;  %v514_v31 = vld [vmem:[%s779_s1 + $0xd4] sm:$0xf]  ;;  %v463_v33 = vor.u32 %v515_v27, %v462_v26  ;;  %v390_v35 = vld [vmem:[%s779_s1 + $0x40] sm:$0xf] }
   0x9   :  { %v464_v32 = vld [vmem:[%s779_s1 + $0xd8] sm:$0xf0]  ;;  %247 = vmatpush.bf16.msra.mxu1 %v471_v17  ;;  %266 = vmatpush.bf16.msra.mxu2 %v411_v21  ;;  %v403_v34 = vor.u32 %v498_v28, %v400_v30  ;;  %v497_v36 = vld [vmem:[%s779_s1 + $0x44] sm:$0xf0]  ;;  %v454_v37 = vld [vmem:[%s779_s1 + $0xc0] sm:$0xf] }
   0xa   :  { %285 = vmatpush.bf16.msra.mxu3 %v475_v25  ;;  %v467_v38 = vor.u32 %v514_v31, %v464_v32  ;;  %v513_v39 = vld [vmem:[%s779_s1 + $0xc4] sm:$0xf0]  ;;  %v496_v40 = vld [vmem:[%s779_s1 + $0x44] sm:$0xf]  ;;  %v392_v41 = vld [vmem:[%s779_s1 + $0x48] sm:$0xf0]  ;;  %v391_v44 = vor.u32 %v497_v36, %v390_v35 }
   0xb   :  { %v512_v42 = vld [vmem:[%s779_s1 + $0xc4] sm:$0xf]  ;;  %v456_v43 = vld [vmem:[%s779_s1 + $0xc8] sm:$0xf0]  ;;  %v455_v45 = vor.u32 %v513_v39, %v454_v37  ;;  %v395_v46 = vor.u32 %v496_v40, %v392_v41  ;;  %v382_v47 = vld [vmem:[%s779_s1 + $0x30] sm:$0xf] }
   0xc   :  { %229 = vmatpush.bf16.msra.mxu0 %v399_v29  ;;  %v495_v48 = vld [vmem:[%s779_s1 + $0x34] sm:$0xf0]  ;;  %v446_v49 = vld [vmem:[%s779_s1 + $0xb0] sm:$0xf]  ;;  %v459_v50 = vor.u32 %v512_v42, %v456_v43  ;;  %v494_v52 = vld [vmem:[%s779_s1 + $0x34] sm:$0xf] }
   0xd   :  { %248 = vmatpush.bf16.msra.mxu1 %v463_v33  ;;  %267 = vmatpush.bf16.msra.mxu2 %v403_v34  ;;  %v511_v51 = vld [vmem:[%s779_s1 + $0xb4] sm:$0xf0]  ;;  %v384_v53 = vld [vmem:[%s779_s1 + $0x38] sm:$0xf0]  ;;  %v510_v54 = vld [vmem:[%s779_s1 + $0xb4] sm:$0xf]  ;;  %v383_v56 = vor.u32 %v495_v48, %v382_v47 }
   0xe   :  { %286 = vmatpush.bf16.msra.mxu3 %v467_v38  ;;  %v448_v55 = vld [vmem:[%s779_s1 + $0xb8] sm:$0xf0]  ;;  %v447_v57 = vor.u32 %v511_v51, %v446_v49  ;;  %v387_v58 = vor.u32 %v494_v52, %v384_v53  ;;  %v374_v59 = vld [vmem:[%s779_s1 + $0x20] sm:$0xf]  ;;  %v493_v60 = vld [vmem:[%s779_s1 + $0x24] sm:$0xf0] }
   0xf   :  { %v438_v61 = vld [vmem:[%s779_s1 + $0xa0] sm:$0xf]  ;;  %v451_v62 = vor.u32 %v510_v54, %v448_v55  ;;  %v509_v63 = vld [vmem:[%s779_s1 + $0xa4] sm:$0xf0]  ;;  %v492_v0 = vld [vmem:[%s779_s1 + $0x24] sm:$0xf]  ;;  %v375_v4 = vor.u32 %v493_v60, %v374_v59 }
  0x10   :  { %230 = vmatpush.bf16.msra.mxu0 %v391_v44  ;;  %v376_v1 = vld [vmem:[%s779_s1 + $0x28] sm:$0xf0]  ;;  %v508_v2 = vld [vmem:[%s779_s1 + $0xa4] sm:$0xf]  ;;  %v439_v5 = vor.u32 %v509_v63, %v438_v61  ;;  %v366_v7 = vld [vmem:[%s779_s1 + $0x10] sm:$0xf] }
  0x11   :  { %249 = vmatpush.bf16.msra.mxu1 %v455_v45  ;;  %268 = vmatpush.bf16.msra.mxu2 %v395_v46  ;;  %v440_v3 = vld [vmem:[%s779_s1 + $0xa8] sm:$0xf0]  ;;  %v379_v6 = vor.u32 %v492_v0, %v376_v1  ;;  %v491_v8 = vld [vmem:[%s779_s1 + $0x14] sm:$0xf0]  ;;  %v430_v9 = vld [vmem:[%s779_s1 + $0x90] sm:$0xf] }
  0x12   :  { %287 = vmatpush.bf16.msra.mxu3 %v459_v50  ;;  %v443_v10 = vor.u32 %v508_v2, %v440_v3  ;;  %v507_v11 = vld [vmem:[%s779_s1 + $0x94] sm:$0xf0]  ;;  %v490_v12 = vld [vmem:[%s779_s1 + $0x14] sm:$0xf]  ;;  %v368_v13 = vld [vmem:[%s779_s1 + $0x18] sm:$0xf0]  ;;  %v367_v16 = vor.u32 %v491_v8, %v366_v7 }
  0x13   :  { %v506_v14 = vld [vmem:[%s779_s1 + $0x94] sm:$0xf]  ;;  %v432_v15 = vld [vmem:[%s779_s1 + $0x98] sm:$0xf0]  ;;  %v431_v17 = vor.u32 %v507_v11, %v430_v9  ;;  %v371_v18 = vor.u32 %v490_v12, %v368_v13  ;;  %v358_v19 = vld [vmem:[%s779_s1] sm:$0xf] }
  0x14   :  { %231 = vmatpush.bf16.msra.mxu0 %v383_v56  ;;  %v489_v20 = vld [vmem:[%s779_s1 + $0x4] sm:$0xf0]  ;;  %v422_v21 = vld [vmem:[%s779_s1 + $0x80] sm:$0xf]  ;;  %v435_v22 = vor.u32 %v506_v14, %v432_v15  ;;  %v488_v24 = vld [vmem:[%s779_s1 + $0x4] sm:$0xf] }
  0x15   :  { %250 = vmatpush.bf16.msra.mxu1 %v447_v57  ;;  %269 = vmatpush.bf16.msra.mxu2 %v387_v58  ;;  %v505_v23 = vld [vmem:[%s779_s1 + $0x84] sm:$0xf0]  ;;  %v360_v25 = vld [vmem:[%s779_s1 + $0x8] sm:$0xf0]  ;;  %v504_v26 = vld [vmem:[%s779_s1 + $0x84] sm:$0xf]  ;;  %v359_v28 = vor.u32 %v489_v20, %v358_v19 }
  0x16   :  { %288 = vmatpush.bf16.msra.mxu3 %v451_v62  ;;  %v424_v27 = vld [vmem:[%s779_s1 + $0x88] sm:$0xf0]  ;;  %v342_v29 = vld [vmem:[%s780_s0] sm:$0xf]  ;;  %v485_v30 = vld [vmem:[%s780_s0 + $0x4] sm:$0xf0]  ;;  %v423_v31 = vor.u32 %v505_v23, %v422_v21  ;;  %v363_v32 = vor.u32 %v488_v24, %v360_v25 }
  0x17   :  { %v484_v33 = vld [vmem:[%s780_s0 + $0x4] sm:$0xf]  ;;  %v344_v34 = vld [vmem:[%s780_s0 + $0x8] sm:$0xf0]  ;;  %v427_v35 = vor.u32 %v504_v26, %v424_v27  ;;  %v343_v36 = vor.u32 %v485_v30, %v342_v29  ;;  %v350_v38 = vld [vmem:[%s780_s0 + $0x10] sm:$0xf] }
  0x18   :  { %232 = vmatpush.bf16.msra.mxu0 %v375_v4  ;;  %v347_v37 = vor.u32 %v484_v33, %v344_v34  ;;  %v487_v39 = vld [vmem:[%s780_s0 + $0x14] sm:$0xf0]  ;;  %v486_v40 = vld [vmem:[%s780_s0 + $0x14] sm:$0xf]  ;;  %v352_v41 = vld [vmem:[%s780_s0 + $0x18] sm:$0xf0] }
  0x19   :  { %251 = vmatpush.bf16.msra.mxu1 %v439_v5  ;;  %270 = vmatpush.bf16.msra.mxu2 %v379_v6  ;;  %v351_v42 = vor.u32 %v487_v39, %v350_v38  ;;  %v355_v43 = vor.u32 %v486_v40, %v352_v41 }
  0x1a   :  { %289 = vmatpush.bf16.msra.mxu3 %v443_v10 }
  0x1c   :  { %233 = vmatpush.bf16.msra.mxu0 %v367_v16 }
  0x1d   :  { %252 = vmatpush.bf16.msra.mxu1 %v431_v17  ;;  %271 = vmatpush.bf16.msra.mxu2 %v371_v18 }
  0x1e   :  { %290 = vmatpush.bf16.msra.mxu3 %v435_v22 }
  0x20   :  { %234 = vmatpush.bf16.msra.mxu0 %v359_v28 }
  0x21   :  { %253 = vmatpush.bf16.msra.mxu1 %v423_v31  ;;  %272 = vmatpush.bf16.msra.mxu2 %v363_v32 }
  0x22   :  { %291 = vmatpush.bf16.msra.mxu3 %v427_v35 }
  0x23   :  { %235 = vmatmul.bf16.vlgmr.msra.gmra.mxu0 %v343_v36 }
  0x24   :  { %254 = vmatmul.bf16.vlgmr.msra.gmra.mxu1 %v347_v37  ;;  %273 = vmatmul.bf16.vlgmr.msra.gmra.mxu2 %v343_v36 }
  0x25   :  { %292 = vmatmul.bf16.vlgmr.msra.gmra.mxu3 %v347_v37 }
  0x33   :  { %240 = vmatmul.bf16.gmra.mxu0 %v351_v42 }
  0x34   :  { %259 = vmatmul.bf16.gmra.mxu1 %v355_v43  ;;  %278 = vmatmul.bf16.gmra.mxu2 %v351_v42 }
  0x35   :  { %297 = vmatmul.bf16.gmra.mxu3 %v355_v43 }
  0xa0   :  { %v236_v44 = vpop.f32.mrf.mxu0 }
  0xa1   :  { %v255_v45 = vpop.f32.mrf.mxu1 }
  0xa2   :  { %v256_v46 = vadd.f32 %v255_v45, %v236_v44 }
  0xa4   :  { %vm303_vm0 = vcmp.gt.f32.partialorder %v256_v46, 0.0  ;;  %v311_v47 = vmul.f32 0.2, %v256_v46 }
  0xa6   :  { %v319_v48 = vsel %vm303_vm0, %v256_v46, %v311_v47 }
  0xa7   :  { %327 = vst [vmem:[%s781_s2] sm:$0xff] %v319_v48  ;;  %v274_v49 = vpop.f32.mrf.mxu2 }
  0xa8   :  { %v293_v50 = vpop.f32.mrf.mxu3  ;;  %v238_v51 = vpop.f32.mrf.mxu0 }
  0xa9   :  { %v294_v52 = vadd.f32 %v293_v50, %v274_v49  ;;  %v257_v53 = vpop.f32.mrf.mxu1 }
  0xaa   :  { %v258_v54 = vadd.f32 %v257_v53, %v238_v51 }
  0xab   :  { %vm304_vm1 = vcmp.gt.f32.partialorder %v294_v52, 0.0  ;;  %v312_v55 = vmul.f32 0.2, %v294_v52 }
  0xac   :  { %vm305_vm3 = vcmp.gt.f32.partialorder %v258_v54, 0.0  ;;  %v313_v56 = vmul.f32 0.2, %v258_v54 }
  0xad   :  { %v320_v57 = vsel %vm304_vm1, %v294_v52, %v312_v55 }
  0xae   :  { %329 = vst.msk [vmem:[%s781_s2 + $0x8] sm:$0xff] %vm328_vm2, %v320_v57  ;;  %v321_v58 = vsel %vm305_vm3, %v258_v54, %v313_v56 }
  0xaf   :  { %330 = vst [vmem:[%s781_s2 + $0x10] sm:$0xff] %v321_v58  ;;  %v276_v59 = vpop.f32.mrf.mxu2 }
  0xb0   :  { %v295_v60 = vpop.f32.mrf.mxu3  ;;  %v241_v61 = vpop.f32.mrf.mxu0 }
  0xb1   :  { %v296_v62 = vadd.f32 %v295_v60, %v276_v59  ;;  %v260_v63 = vpop.f32.mrf.mxu1 }
  0xb2   :  { %v261_v0 = vadd.f32 %v260_v63, %v241_v61 }
  0xb3   :  { %vm306_vm4 = vcmp.gt.f32.partialorder %v296_v62, 0.0  ;;  %v314_v1 = vmul.f32 0.2, %v296_v62 }
  0xb4   :  { %vm307_vm5 = vcmp.gt.f32.partialorder %v261_v0, 0.0  ;;  %v315_v2 = vmul.f32 0.2, %v261_v0 }
  0xb5   :  { %v322_v3 = vsel %vm306_vm4, %v296_v62, %v314_v1 }
  0xb6   :  { %331 = vst.msk [vmem:[%s781_s2 + $0x18] sm:$0xff] %vm328_vm2, %v322_v3  ;;  %v323_v4 = vsel %vm307_vm5, %v261_v0, %v315_v2 }
  0xb7   :  { %332 = vst [vmem:[%s781_s2 + $0x20] sm:$0xff] %v323_v4  ;;  %v279_v5 = vpop.f32.mrf.mxu2 }
  0xb8   :  { %v298_v6 = vpop.f32.mrf.mxu3  ;;  %v243_v7 = vpop.f32.mrf.mxu0 }
  0xb9   :  { %v299_v8 = vadd.f32 %v298_v6, %v279_v5  ;;  %v262_v9 = vpop.f32.mrf.mxu1 }
  0xba   :  { %v263_v10 = vadd.f32 %v262_v9, %v243_v7 }
  0xbb   :  { %vm308_vm6 = vcmp.gt.f32.partialorder %v299_v8, 0.0  ;;  %v316_v11 = vmul.f32 0.2, %v299_v8 }
  0xbc   :  { %vm309_vm7 = vcmp.gt.f32.partialorder %v263_v10, 0.0  ;;  %v317_v12 = vmul.f32 0.2, %v263_v10 }
  0xbd   :  { %v324_v13 = vsel %vm308_vm6, %v299_v8, %v316_v11 }
  0xbe   :  { %333 = vst.msk [vmem:[%s781_s2 + $0x28] sm:$0xff] %vm328_vm2, %v324_v13  ;;  %v325_v14 = vsel %vm309_vm7, %v263_v10, %v317_v12 }
  0xbf   :  { %334 = vst [vmem:[%s781_s2 + $0x30] sm:$0xff] %v325_v14  ;;  %v281_v15 = vpop.f32.mrf.mxu2 }
  0xc0   :  { %v300_v16 = vpop.f32.mrf.mxu3 }
  0xc1   :  { %v301_v17 = vadd.f32 %v300_v16, %v281_v15 }
  0xc3   :  { %vm310_vm8 = vcmp.gt.f32.partialorder %v301_v17, 0.0  ;;  %v318_v18 = vmul.f32 0.2, %v301_v17 }
  0xc5   :  { %v326_v19 = vsel %vm310_vm8, %v301_v17, %v318_v18 }
  0xc6   :  { %335 = vst.msk [vmem:[%s781_s2 + $0x38] sm:$0xff] %vm328_vm2, %v326_v19 }

// kernel: discriminator_forward.7
= control target key start
LH: loop header
LB: loop body
LE: loop exit
PB: predicated region body
PF: predicated region fallthrough
CT: control target
= control target key end

     0   :  { %vm503_vm1 = vcmask 392192   ;;  %s995_s1 = inlined_call_operand.vmem [shape: bf16[512,48], index: 1, kind: input, shape index: {}]   ;;  %s996_s0 = inlined_call_operand.vmem [shape: bf16[64,512], index: 0, kind: input, shape index: {}]   ;;  %s997_s2 = inlined_call_operand.vmem [shape: f32[64,48], index: 2, kind: output, shape index: {}]  }
   0x1   :  { %v731_v0 = vld [vmem:[%s995_s1 + $0x38] sm:$0xff]  ;;  %v730_v4 = vld [vmem:[%s995_s1 + $0x30] sm:$0xff]  ;;  %v729_v8 = vld [vmem:[%s995_s1 + $0x28] sm:$0xff] }
   0x2   :  { %v739_v1 = vld [vmem:[%s995_s1 + $0x78] sm:$0xff]  ;;  %363 = vmatpush.bf16.msra.mxu0 %v731_v0  ;;  %v738_v5 = vld [vmem:[%s995_s1 + $0x70] sm:$0xff]  ;;  %v737_v9 = vld [vmem:[%s995_s1 + $0x68] sm:$0xff] }
   0x3   :  { %v747_v2 = vld [vmem:[%s995_s1 + $0xb8] sm:$0xff]  ;;  %392 = vmatpush.bf16.msra.mxu1 %v739_v1  ;;  %v746_v6 = vld [vmem:[%s995_s1 + $0xb0] sm:$0xff]  ;;  %v745_v10 = vld [vmem:[%s995_s1 + $0xa8] sm:$0xff] }
   0x4   :  { %v755_v3 = vld [vmem:[%s995_s1 + $0xf8] sm:$0xff]  ;;  %421 = vmatpush.bf16.msra.mxu2 %v747_v2  ;;  %v754_v7 = vld [vmem:[%s995_s1 + $0xf0] sm:$0xff]  ;;  %v753_v11 = vld [vmem:[%s995_s1 + $0xe8] sm:$0xff] }
   0x5   :  { %450 = vmatpush.bf16.msra.mxu3 %v755_v3  ;;  %v728_v12 = vld [vmem:[%s995_s1 + $0x20] sm:$0xff]  ;;  %v727_v16 = vld [vmem:[%s995_s1 + $0x18] sm:$0xff]  ;;  %v726_v20 = vld [vmem:[%s995_s1 + $0x10] sm:$0xff] }
   0x6   :  { %364 = vmatpush.bf16.msra.mxu0 %v730_v4  ;;  %v736_v13 = vld [vmem:[%s995_s1 + $0x60] sm:$0xff]  ;;  %v735_v17 = vld [vmem:[%s995_s1 + $0x58] sm:$0xff]  ;;  %v734_v21 = vld [vmem:[%s995_s1 + $0x50] sm:$0xff] }
   0x7   :  { %393 = vmatpush.bf16.msra.mxu1 %v738_v5  ;;  %v744_v14 = vld [vmem:[%s995_s1 + $0xa0] sm:$0xff]  ;;  %v743_v18 = vld [vmem:[%s995_s1 + $0x98] sm:$0xff]  ;;  %v742_v22 = vld [vmem:[%s995_s1 + $0x90] sm:$0xff] }
   0x8   :  { %422 = vmatpush.bf16.msra.mxu2 %v746_v6  ;;  %v752_v15 = vld [vmem:[%s995_s1 + $0xe0] sm:$0xff]  ;;  %v751_v19 = vld [vmem:[%s995_s1 + $0xd8] sm:$0xff]  ;;  %v750_v23 = vld [vmem:[%s995_s1 + $0xd0] sm:$0xff] }
   0x9   :  { %451 = vmatpush.bf16.msra.mxu3 %v754_v7  ;;  %v725_v24 = vld [vmem:[%s995_s1 + $0x8] sm:$0xff]  ;;  %v724_v28 = vld [vmem:[%s995_s1] sm:$0xff]  ;;  %v710_v33 = vld [vmem:[%s996_s0 + $0xc] sm:$0xf0] }
   0xa   :  { %365 = vmatpush.bf16.msra.mxu0 %v729_v8  ;;  %v733_v25 = vld [vmem:[%s995_s1 + $0x48] sm:$0xff]  ;;  %v732_v29 = vld [vmem:[%s995_s1 + $0x40] sm:$0xff]  ;;  %v520_v35 = vld [vmem:[%s996_s0 + $0x10] sm:$0xf0] }
   0xb   :  { %394 = vmatpush.bf16.msra.mxu1 %v737_v9  ;;  %v741_v26 = vld [vmem:[%s995_s1 + $0x88] sm:$0xff]  ;;  %v740_v30 = vld [vmem:[%s995_s1 + $0x80] sm:$0xff]  ;;  %v711_v37 = vld [vmem:[%s996_s0 + $0x14] sm:$0xf0] }
   0xc   :  { %423 = vmatpush.bf16.msra.mxu2 %v745_v10  ;;  %v749_v27 = vld [vmem:[%s995_s1 + $0xc8] sm:$0xff]  ;;  %v748_v31 = vld [vmem:[%s995_s1 + $0xc0] sm:$0xff]  ;;  %v528_v39 = vld [vmem:[%s996_s0 + $0x18] sm:$0xf0] }
   0xd   :  { %452 = vmatpush.bf16.msra.mxu3 %v753_v11  ;;  %v518_v32 = vld [vmem:[%s996_s0] sm:$0xf]  ;;  %v708_v34 = vld [vmem:[%s996_s0 + $0x4] sm:$0xf]  ;;  %v526_v36 = vld [vmem:[%s996_s0 + $0x8] sm:$0xf] }
   0xe   :  { %366 = vmatpush.bf16.msra.mxu0 %v728_v12  ;;  %v709_v38 = vld [vmem:[%s996_s0 + $0xc] sm:$0xf]  ;;  %v519_v40 = vor.u32 %v710_v33, %v518_v32  ;;  %v523_v41 = vor.u32 %v708_v34, %v520_v35  ;;  %v527_v42 = vor.u32 %v711_v37, %v526_v36  ;;  %v534_v44 = vld [vmem:[%s996_s0 + $0x20] sm:$0xf]  ;;  %v714_v45 = vld [vmem:[%s996_s0 + $0x2c] sm:$0xf0] }
   0xf   :  { %395 = vmatpush.bf16.msra.mxu1 %v736_v13  ;;  %v531_v43 = vor.u32 %v709_v38, %v528_v39  ;;  %v712_v46 = vld [vmem:[%s996_s0 + $0x24] sm:$0xf]  ;;  %v536_v47 = vld [vmem:[%s996_s0 + $0x30] sm:$0xf0]  ;;  %v542_v48 = vld [vmem:[%s996_s0 + $0x28] sm:$0xf]  ;;  %v535_v52 = vor.u32 %v714_v45, %v534_v44 }
  0x10   :  { %424 = vmatpush.bf16.msra.mxu2 %v744_v14  ;;  %v715_v49 = vld [vmem:[%s996_s0 + $0x34] sm:$0xf0]  ;;  %v713_v50 = vld [vmem:[%s996_s0 + $0x2c] sm:$0xf]  ;;  %v544_v51 = vld [vmem:[%s996_s0 + $0x38] sm:$0xf0]  ;;  %v539_v53 = vor.u32 %v712_v46, %v536_v47 }
  0x11   :  { %453 = vmatpush.bf16.msra.mxu3 %v752_v15  ;;  %v543_v54 = vor.u32 %v715_v49, %v542_v48  ;;  %v547_v55 = vor.u32 %v713_v50, %v544_v51  ;;  %v550_v56 = vld [vmem:[%s996_s0 + $0x40] sm:$0xf]  ;;  %v718_v57 = vld [vmem:[%s996_s0 + $0x4c] sm:$0xf0]  ;;  %v716_v58 = vld [vmem:[%s996_s0 + $0x44] sm:$0xf] }
  0x12   :  { %367 = vmatpush.bf16.msra.mxu0 %v727_v16  ;;  %v552_v59 = vld [vmem:[%s996_s0 + $0x50] sm:$0xf0]  ;;  %v558_v60 = vld [vmem:[%s996_s0 + $0x48] sm:$0xf]  ;;  %v719_v61 = vld [vmem:[%s996_s0 + $0x54] sm:$0xf0]  ;;  %v551_v0 = vor.u32 %v718_v57, %v550_v56 }
  0x13   :  { %396 = vmatpush.bf16.msra.mxu1 %v735_v17  ;;  %v717_v62 = vld [vmem:[%s996_s0 + $0x4c] sm:$0xf]  ;;  %v560_v63 = vld [vmem:[%s996_s0 + $0x58] sm:$0xf0]  ;;  %v555_v1 = vor.u32 %v716_v58, %v552_v59  ;;  %v559_v2 = vor.u32 %v719_v61, %v558_v60  ;;  %v566_v4 = vld [vmem:[%s996_s0 + $0x60] sm:$0xf] }
  0x14   :  { %425 = vmatpush.bf16.msra.mxu2 %v743_v18  ;;  %v563_v3 = vor.u32 %v717_v62, %v560_v63  ;;  %v722_v5 = vld [vmem:[%s996_s0 + $0x6c] sm:$0xf0]  ;;  %v720_v6 = vld [vmem:[%s996_s0 + $0x64] sm:$0xf]  ;;  %v568_v7 = vld [vmem:[%s996_s0 + $0x70] sm:$0xf0] }
  0x15   :  { %454 = vmatpush.bf16.msra.mxu3 %v751_v19  ;;  %v574_v8 = vld [vmem:[%s996_s0 + $0x68] sm:$0xf]  ;;  %v723_v9 = vld [vmem:[%s996_s0 + $0x74] sm:$0xf0]  ;;  %v721_v10 = vld [vmem:[%s996_s0 + $0x6c] sm:$0xf]  ;;  %v567_v12 = vor.u32 %v722_v5, %v566_v4  ;;  %v571_v13 = vor.u32 %v720_v6, %v568_v7 }
  0x16   :  { %368 = vmatpush.bf16.msra.mxu0 %v726_v20  ;;  %v576_v11 = vld [vmem:[%s996_s0 + $0x78] sm:$0xf0]  ;;  %v575_v14 = vor.u32 %v723_v9, %v574_v8 }
  0x17   :  { %397 = vmatpush.bf16.msra.mxu1 %v734_v21  ;;  %v579_v15 = vor.u32 %v721_v10, %v576_v11 }
  0x18   :  { %426 = vmatpush.bf16.msra.mxu2 %v742_v22 }
  0x19   :  { %455 = vmatpush.bf16.msra.mxu3 %v750_v23 }
  0x1a   :  { %369 = vmatpush.bf16.msra.mxu0 %v725_v24 }
  0x1b   :  { %398 = vmatpush.bf16.msra.mxu1 %v733_v25 }
  0x1c   :  { %427 = vmatpush.bf16.msra.mxu2 %v741_v26 }
  0x1d   :  { %456 = vmatpush.bf16.msra.mxu3 %v749_v27 }
  0x1e   :  { %370 = vmatpush.bf16.msra.mxu0 %v724_v28 }
  0x1f   :  { %399 = vmatpush.bf16.msra.mxu1 %v732_v29 }
  0x20   :  { %428 = vmatpush.bf16.msra.mxu2 %v740_v30 }
  0x21   :  { %457 = vmatpush.bf16.msra.mxu3 %v748_v31  ;;  %371 = vmatmul.bf16.vlgmr.msra.gmra.mxu0 %v519_v40 }
  0x22   :  { %400 = vmatmul.bf16.vlgmr.msra.gmra.mxu1 %v523_v41 }
  0x23   :  { %429 = vmatmul.bf16.vlgmr.msra.gmra.mxu2 %v527_v42 }
  0x24   :  { %458 = vmatmul.bf16.vlgmr.msra.gmra.mxu3 %v531_v43 }
  0x31   :  { %376 = vmatmul.bf16.gmra.mxu0 %v535_v52 }
  0x32   :  { %405 = vmatmul.bf16.gmra.mxu1 %v539_v53 }
  0x33   :  { %434 = vmatmul.bf16.gmra.mxu2 %v543_v54 }
  0x34   :  { %463 = vmatmul.bf16.gmra.mxu3 %v547_v55 }
  0x41   :  { %381 = vmatmul.bf16.gmra.mxu0 %v551_v0 }
  0x42   :  { %410 = vmatmul.bf16.gmra.mxu1 %v555_v1 }
  0x43   :  { %439 = vmatmul.bf16.gmra.mxu2 %v559_v2 }
  0x44   :  { %468 = vmatmul.bf16.gmra.mxu3 %v563_v3 }
  0x51   :  { %386 = vmatmul.bf16.gmra.mxu0 %v567_v12 }
  0x52   :  { %415 = vmatmul.bf16.gmra.mxu1 %v571_v13 }
  0x53   :  { %444 = vmatmul.bf16.gmra.mxu2 %v575_v14 }
  0x54   :  { %473 = vmatmul.bf16.gmra.mxu3 %v579_v15 }
  0x9e   :  { %v372_v16 = vpop.f32.mrf.mxu0 }
  0x9f   :  { %v401_v17 = vpop.f32.mrf.mxu1 }
  0xa0   :  { %v402_v18 = vadd.f32 %v401_v17, %v372_v16 }
  0xa6   :  { %v430_v19 = vpop.f32.mrf.mxu2  ;;  %v374_v22 = vpop.f32.mrf.mxu0 }
  0xa7   :  { %v459_v20 = vpop.f32.mrf.mxu3  ;;  %v431_v21 = vadd.f32 %v430_v19, %v402_v18  ;;  %v403_v23 = vpop.f32.mrf.mxu1 }
  0xa8   :  { %v404_v27 = vadd.f32 %v403_v23, %v374_v22 }
  0xa9   :  { %v460_v24 = vadd.f32 %v459_v20, %v431_v21 }
  0xab   :  { %vm479_vm0 = vcmp.gt.f32.partialorder %v460_v24, 0.0  ;;  %v487_v25 = vmul.f32 0.2, %v460_v24 }
  0xad   :  { %v495_v26 = vsel %vm479_vm0, %v460_v24, %v487_v25 }
  0xae   :  { %504 = vst.msk [vmem:[%s997_s2] sm:$0xff] %vm503_vm1, %v495_v26  ;;  %v432_v28 = vpop.f32.mrf.mxu2  ;;  %v377_v31 = vpop.f32.mrf.mxu0 }
  0xaf   :  { %v461_v29 = vpop.f32.mrf.mxu3  ;;  %v433_v30 = vadd.f32 %v432_v28, %v404_v27  ;;  %v406_v32 = vpop.f32.mrf.mxu1 }
  0xb0   :  { %v407_v35 = vadd.f32 %v406_v32, %v377_v31 }
  0xb1   :  { %v462_v33 = vadd.f32 %v461_v29, %v433_v30 }
  0xb3   :  { %vm480_vm2 = vcmp.gt.f32.partialorder %v462_v33, 0.0  ;;  %v488_v34 = vmul.f32 0.2, %v462_v33 }
  0xb5   :  { %v496_v36 = vsel %vm480_vm2, %v462_v33, %v488_v34 }
  0xb6   :  { %505 = vst.msk [vmem:[%s997_s2 + $0x8] sm:$0xff] %vm503_vm1, %v496_v36  ;;  %v435_v37 = vpop.f32.mrf.mxu2  ;;  %v379_v40 = vpop.f32.mrf.mxu0 }
  0xb7   :  { %v464_v38 = vpop.f32.mrf.mxu3  ;;  %v436_v39 = vadd.f32 %v435_v37, %v407_v35  ;;  %v408_v41 = vpop.f32.mrf.mxu1 }
  0xb8   :  { %v409_v45 = vadd.f32 %v408_v41, %v379_v40 }
  0xb9   :  { %v465_v42 = vadd.f32 %v464_v38, %v436_v39 }
  0xbb   :  { %vm481_vm3 = vcmp.gt.f32.partialorder %v465_v42, 0.0  ;;  %v489_v43 = vmul.f32 0.2, %v465_v42 }
  0xbd   :  { %v497_v44 = vsel %vm481_vm3, %v465_v42, %v489_v43 }
  0xbe   :  { %506 = vst.msk [vmem:[%s997_s2 + $0x10] sm:$0xff] %vm503_vm1, %v497_v44  ;;  %v437_v46 = vpop.f32.mrf.mxu2  ;;  %v382_v49 = vpop.f32.mrf.mxu0 }
  0xbf   :  { %v466_v47 = vpop.f32.mrf.mxu3  ;;  %v438_v48 = vadd.f32 %v437_v46, %v409_v45  ;;  %v411_v50 = vpop.f32.mrf.mxu1 }
  0xc0   :  { %v412_v53 = vadd.f32 %v411_v50, %v382_v49 }
  0xc1   :  { %v467_v51 = vadd.f32 %v466_v47, %v438_v48 }
  0xc3   :  { %vm482_vm4 = vcmp.gt.f32.partialorder %v467_v51, 0.0  ;;  %v490_v52 = vmul.f32 0.2, %v467_v51 }
  0xc5   :  { %v498_v54 = vsel %vm482_vm4, %v467_v51, %v490_v52 }
  0xc6   :  { %507 = vst.msk [vmem:[%s997_s2 + $0x18] sm:$0xff] %vm503_vm1, %v498_v54  ;;  %v440_v55 = vpop.f32.mrf.mxu2  ;;  %v384_v58 = vpop.f32.mrf.mxu0 }
  0xc7   :  { %v469_v56 = vpop.f32.mrf.mxu3  ;;  %v441_v57 = vadd.f32 %v440_v55, %v412_v53  ;;  %v413_v59 = vpop.f32.mrf.mxu1 }
  0xc8   :  { %v414_v63 = vadd.f32 %v413_v59, %v384_v58 }
  0xc9   :  { %v470_v60 = vadd.f32 %v469_v56, %v441_v57 }
  0xcb   :  { %vm483_vm5 = vcmp.gt.f32.partialorder %v470_v60, 0.0  ;;  %v491_v61 = vmul.f32 0.2, %v470_v60 }
  0xcd   :  { %v499_v62 = vsel %vm483_vm5, %v470_v60, %v491_v61 }
  0xce   :  { %508 = vst.msk [vmem:[%s997_s2 + $0x20] sm:$0xff] %vm503_vm1, %v499_v62  ;;  %v442_v0 = vpop.f32.mrf.mxu2  ;;  %v387_v3 = vpop.f32.mrf.mxu0 }
  0xcf   :  { %v471_v1 = vpop.f32.mrf.mxu3  ;;  %v443_v2 = vadd.f32 %v442_v0, %v414_v63  ;;  %v416_v4 = vpop.f32.mrf.mxu1 }
  0xd0   :  { %v417_v7 = vadd.f32 %v416_v4, %v387_v3 }
  0xd1   :  { %v472_v5 = vadd.f32 %v471_v1, %v443_v2 }
  0xd3   :  { %vm484_vm6 = vcmp.gt.f32.partialorder %v472_v5, 0.0  ;;  %v492_v6 = vmul.f32 0.2, %v472_v5 }
  0xd5   :  { %v500_v8 = vsel %vm484_vm6, %v472_v5, %v492_v6 }
  0xd6   :  { %509 = vst.msk [vmem:[%s997_s2 + $0x28] sm:$0xff] %vm503_vm1, %v500_v8  ;;  %v445_v9 = vpop.f32.mrf.mxu2  ;;  %v389_v13 = vpop.f32.mrf.mxu0 }
  0xd7   :  { %v474_v10 = vpop.f32.mrf.mxu3  ;;  %v446_v11 = vadd.f32 %v445_v9, %v417_v7  ;;  %v418_v14 = vpop.f32.mrf.mxu1 }
  0xd8   :  { %v419_v17 = vadd.f32 %v418_v14, %v389_v13 }
  0xd9   :  { %v475_v12 = vadd.f32 %v474_v10, %v446_v11 }
  0xdb   :  { %vm485_vm7 = vcmp.gt.f32.partialorder %v475_v12, 0.0  ;;  %v493_v15 = vmul.f32 0.2, %v475_v12 }
  0xdd   :  { %v501_v16 = vsel %vm485_vm7, %v475_v12, %v493_v15 }
  0xde   :  { %510 = vst.msk [vmem:[%s997_s2 + $0x30] sm:$0xff] %vm503_vm1, %v501_v16  ;;  %v447_v18 = vpop.f32.mrf.mxu2 }
  0xdf   :  { %v448_v19 = vadd.f32 %v447_v18, %v419_v17  ;;  %v476_v20 = vpop.f32.mrf.mxu3 }
  0xe1   :  { %v477_v21 = vadd.f32 %v476_v20, %v448_v19 }
  0xe3   :  { %vm486_vm8 = vcmp.gt.f32.partialorder %v477_v21, 0.0  ;;  %v494_v22 = vmul.f32 0.2, %v477_v21 }
  0xe5   :  { %v502_v23 = vsel %vm486_vm8, %v477_v21, %v494_v22 }
  0xe6   :  { %511 = vst.msk [vmem:[%s997_s2 + $0x38] sm:$0xff] %vm503_vm1, %v502_v23 }

</bundles_post_ra>
